<compile_context>
chip_gen: v7x
topology: tpu7x:2x2x1
jax: 0.10.0
libtpu: 0.0.40
codegen_flags: <defaults>
</compile_context>

<pallas_src>
import functools

import jax
import jax.numpy as jnp
from jax.experimental import pallas as pl
from jax.experimental.pallas import tpu as pltpu


_VMEM = pl.BlockSpec(memory_space=pltpu.MemorySpace.VMEM)


def _round_up(x, m):
    return (x + m - 1) // m * m


# ----------------------------------------------------------------------------
# Fused Pallas kernel: encoder recurrence + decoder recursion + linear head.
# ----------------------------------------------------------------------------
def _fused_encdec_kernel(x_ref, d0_ref, ew_ref, eb_ref, dw_ref, db_ref,
                         wo_ref, bo_ref, out_ref, h_scr, c_scr, y_scr):
    """
    x_ref  : (T, B, P)        padded input sequence, f32
    d0_ref : (B, P)           padded decoder seed  (= input[:, -1, 4:]), f32
    ew_ref : (L, 2P, 4P)      fused+padded encoder [W_ih; W_hh] per layer, bf16
    eb_ref : (L, 1, 4P)       padded encoder bias (b_ih + b_hh) per layer, f32
    dw_ref : (L, 2P, 4P)      decoder LSTM weights, bf16
    db_ref : (L, 1, 4P)       decoder biases, f32
    wo_ref : (P, P)           padded output head weight, bf16
    bo_ref : (1, P)           padded output head bias, f32
    out_ref: (target_len, B, P)   lane-dense per-step decoder outputs, f32
    h_scr, c_scr : (L, B, P)  VMEM-resident hidden / cell state
    y_scr  : (B, P)           VMEM-resident recursive decoder input
    Gate order follows PyTorch nn.LSTM: i, f, g, o (each a full P-wide slab).
    """
    T = x_ref.shape[0]
    L = ew_ref.shape[0]
    P = x_ref.shape[2]
    n_dec = out_ref.shape[0]

    h_scr[...] = jnp.zeros_like(h_scr)
    c_scr[...] = jnp.zeros_like(c_scr)

    def cell(layer_in, l, w_ref, b_ref):
        # One fused (B, 2P) x (2P, 4P) bf16 matmul with f32 accumulation.
        xh = jnp.concatenate([layer_in, h_scr[l]], axis=1).astype(jnp.bfloat16)
        gates = (jnp.dot(xh, w_ref[l], preferred_element_type=jnp.float32)
                 + b_ref[l])
        i_g = jax.nn.sigmoid(gates[:, 0 * P:1 * P])
        f_g = jax.nn.sigmoid(gates[:, 1 * P:2 * P])
        g_g = jnp.tanh(gates[:, 2 * P:3 * P])
        o_g = jax.nn.sigmoid(gates[:, 3 * P:4 * P])
        c_new = f_g * c_scr[l] + i_g * g_g
        h_new = o_g * jnp.tanh(c_new)
        h_scr[l] = h_new
        c_scr[l] = c_new
        return h_new

    # ---------------- encoder: serial over time, layers unrolled -------------
    @pl.loop(0, T)
    def _enc(t):
        layer_in = x_ref[t]
        for l in range(L):
            layer_in = cell(layer_in, l, ew_ref, eb_ref)

    # -------- decoder: recursive prediction, state fully VMEM-resident -------
    y_scr[...] = d0_ref[...]

    @pl.loop(0, n_dec)
    def _dec(t):
        layer_in = y_scr[...]
        for l in range(L):
            layer_in = cell(layer_in, l, dw_ref, db_ref)
        y = (jnp.dot(layer_in.astype(jnp.bfloat16), wo_ref[...],
                     preferred_element_type=jnp.float32) + bo_ref[...])
        out_ref[t] = y          # lane-dense (B, P) store
        y_scr[...] = y          # recursive feedback stays in VMEM


# ----------------------------------------------------------------------------
# Wrapper: pad / reorder inputs, single pallas_call, unpad output.
# ----------------------------------------------------------------------------
def bb_encoder_decoder_forward(inp, params, *, target_len, output_size):
    """Forward pass equivalent to BBEncoderDecoder.forward.

    inp: (B, T, input_size) f32.  Returns (B, target_len * output_size) f32.
    """
    enc_W, enc_b, dec_W, dec_b, w_out_p, b_out_p = params
    B, T, in_sz = inp.shape
    L = enc_W.shape[0]
    P = enc_W.shape[2] // 4

    # Pad features to the 128-lane width and put time on the leading axis so
    # the kernel reads clean (B, P) blocks with x_ref[t].
    x_pad = jnp.zeros((T, B, P), jnp.float32).at[:, :, :in_sz].set(
        jnp.transpose(inp, (1, 0, 2)))
    # decoder seed: input[:, -1, :][:, 4:], zero-padded to (B, P)
    seed = inp[:, -1, 4:]
    d0 = jnp.zeros((B, P), jnp.float32).at[:, :seed.shape[1]].set(seed)

    out_pad = pl.pallas_call(
        _fused_encdec_kernel,
        out_shape=jax.ShapeDtypeStruct((target_len, B, P), jnp.float32),
        in_specs=[_VMEM] * 8,
        out_specs=_VMEM,
        scratch_shapes=[
            pltpu.VMEM((L, B, P), jnp.float32),   # h per layer
            pltpu.VMEM((L, B, P), jnp.float32),   # c per layer
            pltpu.VMEM((B, P), jnp.float32),      # recursive decoder input
        ],
    )(x_pad, d0, enc_W, enc_b, dec_W, dec_b, w_out_p, b_out_p)

    # (target_len, B, P) -> (B, target_len * output_size): layout glue only.
    out = jnp.transpose(out_pad[:, :, :output_size], (1, 0, 2))
    return out.reshape(B, target_len * output_size)


# ----------------------------------------------------------------------------
# Parameter initialization (PyTorch-style uniform ranges) + kernel packing.
# ----------------------------------------------------------------------------
def init_raw_params(key, input_size, output_size, hidden_size, num_layers):
    def lstm_layer(k, in_sz):
        bound = 1.0 / (hidden_size ** 0.5)
        k1, k2, k3, k4 = jax.random.split(k, 4)
        w_ih = jax.random.uniform(k1, (4 * hidden_size, in_sz), jnp.float32,
                                  -bound, bound)
        w_hh = jax.random.uniform(k2, (4 * hidden_size, hidden_size),
                                  jnp.float32, -bound, bound)
        b_ih = jax.random.uniform(k3, (4 * hidden_size,), jnp.float32,
                                  -bound, bound)
        b_hh = jax.random.uniform(k4, (4 * hidden_size,), jnp.float32,
                                  -bound, bound)
        return (w_ih, w_hh, b_ih, b_hh)

    keys = jax.random.split(key, 2 * num_layers + 2)
    enc = [lstm_layer(keys[l], input_size if l == 0 else hidden_size)
           for l in range(num_layers)]
    dec = [lstm_layer(keys[num_layers + l],
                      output_size if l == 0 else hidden_size)
           for l in range(num_layers)]
    lb = 1.0 / (hidden_size ** 0.5)
    w_out = jax.random.uniform(keys[-2], (output_size, hidden_size),
                               jnp.float32, -lb, lb)
    b_out = jax.random.uniform(keys[-1], (output_size,), jnp.float32, -lb, lb)
    return enc, dec, (w_out, b_out)


def _pack_lstm_layer(w_ih, w_hh, b_ih, b_hh, P):
    """Fuse [W_ih; W_hh] and pad every gate block to a full P-wide lane slab.

    Returns W: (2P, 4P) bf16, b: (1, 4P) f32.  Row layout: x-rows at [0:in),
    h-rows at [P:P+H); gate k occupies columns [k*P : k*P+H).  All padding is
    zero, so padded lanes of h/c provably remain zero through the recurrence.
    """
    four_h, in_sz = w_ih.shape
    H = four_h // 4
    W = jnp.zeros((2 * P, 4 * P), jnp.float32)
    b = jnp.zeros((1, 4 * P), jnp.float32)
    w_ih_t, w_hh_t = w_ih.T, w_hh.T
    bias = (b_ih + b_hh)[None, :]
    for g in range(4):
        W = W.at[:in_sz, g * P:g * P + H].set(w_ih_t[:, g * H:(g + 1) * H])
        W = W.at[P:P + H, g * P:g * P + H].set(w_hh_t[:, g * H:(g + 1) * H])
        b = b.at[:, g * P:g * P + H].set(bias[:, g * H:(g + 1) * H])
    return W.astype(jnp.bfloat16), b


def pack_params(raw, input_size, output_size, hidden_size):
    enc_layers, dec_layers, (w_out, b_out) = raw
    P = _round_up(max(input_size, hidden_size, output_size), 128)
    enc = [_pack_lstm_layer(*lp, P) for lp in enc_layers]
    dec = [_pack_lstm_layer(*lp, P) for lp in dec_layers]
    enc_W = jnp.stack([w for w, _ in enc])
    enc_b = jnp.stack([b for _, b in enc])
    dec_W = jnp.stack([w for w, _ in dec])
    dec_b = jnp.stack([b for _, b in dec])
    w_out_p = (jnp.zeros((P, P), jnp.float32)
               .at[:hidden_size, :output_size].set(w_out.T)
               .astype(jnp.bfloat16))
    b_out_p = jnp.zeros((1, P), jnp.float32).at[:, :output_size].set(b_out[None, :])
    return (enc_W, enc_b, dec_W, dec_b, w_out_p, b_out_p)


# ----------------------------------------------------------------------------
# Pure-JAX f32 reference (straight port of the PyTorch math) for validation.
# ----------------------------------------------------------------------------
def _lstm_cell_ref(x, h, c, w_ih, w_hh, b_ih, b_hh):
    gates = x @ w_ih.T + h @ w_hh.T + b_ih + b_hh
    H = h.shape[1]
    i = jax.nn.sigmoid(gates[:, :H])
    f = jax.nn.sigmoid(gates[:, H:2 * H])
    g = jnp.tanh(gates[:, 2 * H:3 * H])
    o = jax.nn.sigmoid(gates[:, 3 * H:])
    c_new = f * c + i * g
    return o * jnp.tanh(c_new), c_new


def reference_forward(inp, raw_params, target_len):
    enc_layers, dec_layers, (w_out, b_out) = raw_params
    B, T, _ = inp.shape
    H = enc_layers[0][1].shape[1]
    seq = inp
    hs, cs = [], []
    for lp in enc_layers:
        h = jnp.zeros((B, H), jnp.float32)
        c = jnp.zeros((B, H), jnp.float32)
        outs = []
        for t in range(T):
            h, c = _lstm_cell_ref(seq[:, t], h, c, *lp)
            outs.append(h)
        seq = jnp.stack(outs, axis=1)
        hs.append(h)
        cs.append(c)
    dec_in = inp[:, -1, 4:]
    ys = []
    for _ in range(target_len):
        layer_in = dec_in
        for l, lp in enumerate(dec_layers):
            hs[l], cs[l] = _lstm_cell_ref(layer_in, hs[l], cs[l], *lp)
            layer_in = hs[l]
        y = layer_in @ w_out.T + b_out
        ys.append(y)
        dec_in = y
    return jnp.concatenate(ys, axis=1)


# ----------------------------------------------------------------------------
if __name__ == "__main__":
    # Small shapes consistent with the module's forward:
    #   output_size = input_size - 4  (decoder_input = input[:, -1, 4:])
    batch_size = 2
    seq_len = 8
    input_size = 8
    output_size = input_size - 4      # = 4
    hidden_size = 32
    num_layers = 2
    target_len = 4

    key = jax.random.PRNGKey(0)
    k_param, k_input = jax.random.split(key)

    raw_params = init_raw_params(k_param, input_size, output_size,
                                 hidden_size, num_layers)
    kernel_params = pack_params(raw_params, input_size, output_size,
                                hidden_size)
    x = jax.random.normal(k_input, (batch_size, seq_len, input_size),
                          jnp.float32)

    fwd = jax.jit(functools.partial(bb_encoder_decoder_forward,
                                    target_len=target_len,
                                    output_size=output_size))
    out = fwd(x, kernel_params)
    jax.block_until_ready(out)

    assert out.shape == (batch_size, target_len * output_size), out.shape
    assert jnp.all(jnp.isfinite(out))

    # Validate against a pure-JAX f32 reference (kernel uses bf16 weights, so
    # allow a small tolerance).
    ref = reference_forward(x, raw_params, target_len)
    max_err = float(jnp.max(jnp.abs(out - ref)))
    assert max_err < 5e-2, f"max abs err vs reference: {max_err}"

    print("KERNEL_OK")
</pallas_src>

<mosaic_0001>
module attributes {stable_mosaic.version = 11 : i64} {
  func.func @_fused_encdec_kernel(%arg0: memref<8x2x128xf32, #tpu.memory_space<vmem>>, %arg1: memref<2x128xf32, #tpu.memory_space<vmem>>, %arg2: memref<2x256x512xbf16, #tpu.memory_space<vmem>>, %arg3: memref<2x1x512xf32, #tpu.memory_space<vmem>>, %arg4: memref<2x256x512xbf16, #tpu.memory_space<vmem>>, %arg5: memref<2x1x512xf32, #tpu.memory_space<vmem>>, %arg6: memref<128x128xbf16, #tpu.memory_space<vmem>>, %arg7: memref<1x128xf32, #tpu.memory_space<vmem>>, %arg8: memref<4x2x128xf32, #tpu.memory_space<vmem>>, %arg9: memref<2x2x128xf32, #tpu.memory_space<vmem>>, %arg10: memref<2x2x128xf32, #tpu.memory_space<vmem>>, %arg11: memref<2x128xf32, #tpu.memory_space<vmem>>) attributes {dimension_semantics = [], scalar_prefetch = 0 : i64, scratch_operands = 3 : i64, tpu.core_type = #tpu.core_type<tc>} {
    %cst = arith.constant 0.000000e+00 : f32
    %0 = vector.broadcast %cst : f32 to vector<2x2x128xf32>
    %c0 = arith.constant 0 : index
    %c0_0 = arith.constant 0 : index
    %c0_1 = arith.constant 0 : index
    %1 = vector.load %arg9[%c0, %c0_0, %c0_1] : memref<2x2x128xf32, #tpu.memory_space<vmem>>, vector<2x2x128xf32>
    tpu.vector_store %arg9[%c0, %c0_0, %c0_1], %0 {strides = array<i32>} : memref<2x2x128xf32, #tpu.memory_space<vmem>>, vector<2x2x128xf32>,
    %cst_2 = arith.constant 0.000000e+00 : f32
    %2 = vector.broadcast %cst_2 : f32 to vector<2x2x128xf32>
    %c0_3 = arith.constant 0 : index
    %c0_4 = arith.constant 0 : index
    %c0_5 = arith.constant 0 : index
    %3 = vector.load %arg10[%c0_3, %c0_4, %c0_5] : memref<2x2x128xf32, #tpu.memory_space<vmem>>, vector<2x2x128xf32>
    tpu.vector_store %arg10[%c0_3, %c0_4, %c0_5], %2 {strides = array<i32>} : memref<2x2x128xf32, #tpu.memory_space<vmem>>, vector<2x2x128xf32>,
    %c0_i32 = arith.constant 0 : i32
    %c8_i32 = arith.constant 8 : i32
    %4 = arith.addi %c0_i32, %c8_i32 : i32
    %c1_i32 = arith.constant 1 : i32
    scf.for %arg12 = %c0_i32 to %4 step %c1_i32  : i32 {
      %c1_i32_14 = arith.constant 1 : i32
      %8 = arith.muli %arg12, %c1_i32_14 : i32
      %c0_i32_15 = arith.constant 0 : i32
      %9 = arith.addi %c0_i32_15, %8 : i32
      %10 = arith.index_cast %9 : i32 to index
      %c0_16 = arith.constant 0 : index
      %c0_17 = arith.constant 0 : index
      %11 = vector.load %arg0[%10, %c0_16, %c0_17] : memref<8x2x128xf32, #tpu.memory_space<vmem>>, vector<1x2x128xf32>
      %12 = vector.shape_cast %11 : vector<1x2x128xf32> to vector<2x128xf32>
      %c0_18 = arith.constant 0 : index
      %c0_19 = arith.constant 0 : index
      %c0_20 = arith.constant 0 : index
      %13 = vector.load %arg9[%c0_18, %c0_19, %c0_20] : memref<2x2x128xf32, #tpu.memory_space<vmem>>, vector<1x2x128xf32>
      %14 = vector.shape_cast %13 : vector<1x2x128xf32> to vector<2x128xf32>
      %15 = tpu.concatenate %12, %14 in 1 : vector<2x128xf32>, vector<2x128xf32> -> vector<2x256xf32>
      %16 = arith.truncf %15 : vector<2x256xf32> to vector<2x256xbf16>
      %c0_21 = arith.constant 0 : index
      %c0_22 = arith.constant 0 : index
      %c0_23 = arith.constant 0 : index
      %17 = vector.load %arg2[%c0_21, %c0_22, %c0_23] : memref<2x256x512xbf16, #tpu.memory_space<vmem>>, vector<1x256x512xbf16>
      %18 = vector.shape_cast %17 : vector<1x256x512xbf16> to vector<256x512xbf16>
      %cst_24 = arith.constant dense<0.000000e+00> : vector<2x512xf32>
      %19 = tpu.matmul %16, %18, %cst_24 {dimension_numbers = #tpu.dot_dimension_numbers<[1], [0], [0], [1], [0, 0, 1, 1], [], []>} : vector<2x256xbf16>, vector<256x512xbf16>, vector<2x512xf32> -> vector<2x512xf32>
      %c0_25 = arith.constant 0 : index
      %c0_26 = arith.constant 0 : index
      %c0_27 = arith.constant 0 : index
      %20 = vector.load %arg3[%c0_25, %c0_26, %c0_27] : memref<2x1x512xf32, #tpu.memory_space<vmem>>, vector<1x1x512xf32>
      %21 = vector.shape_cast %20 : vector<1x1x512xf32> to vector<1x512xf32>
      %22 = vector.broadcast %21 : vector<1x512xf32> to vector<2x512xf32>
      %23 = arith.addf %19, %22 : vector<2x512xf32>
      %24 = vector.extract_strided_slice %23 {offsets = [0, 0], sizes = [2, 128], strides = [1, 1]} : vector<2x512xf32> to vector<2x128xf32>
      %25 = arith.negf %24 : vector<2x128xf32>
      %26 = math.exp %25 : vector<2x128xf32>
      %cst_28 = arith.constant 1.000000e+00 : f32
      %27 = vector.broadcast %cst_28 : f32 to vector<2x128xf32>
      %28 = arith.addf %27, %26 : vector<2x128xf32>
      %29 = arith.divf %27, %28 : vector<2x128xf32>
      %30 = vector.extract_strided_slice %23 {offsets = [0, 128], sizes = [2, 128], strides = [1, 1]} : vector<2x512xf32> to vector<2x128xf32>
      %31 = arith.negf %30 : vector<2x128xf32>
      %32 = math.exp %31 : vector<2x128xf32>
      %cst_29 = arith.constant 1.000000e+00 : f32
      %33 = vector.broadcast %cst_29 : f32 to vector<2x128xf32>
      %34 = arith.addf %33, %32 : vector<2x128xf32>
      %35 = arith.divf %33, %34 : vector<2x128xf32>
      %36 = vector.extract_strided_slice %23 {offsets = [0, 256], sizes = [2, 128], strides = [1, 1]} : vector<2x512xf32> to vector<2x128xf32>
      %37 = math.tanh %36 : vector<2x128xf32>
      %38 = vector.extract_strided_slice %23 {offsets = [0, 384], sizes = [2, 128], strides = [1, 1]} : vector<2x512xf32> to vector<2x128xf32>
      %39 = arith.negf %38 : vector<2x128xf32>
      %40 = math.exp %39 : vector<2x128xf32>
      %cst_30 = arith.constant 1.000000e+00 : f32
      %41 = vector.broadcast %cst_30 : f32 to vector<2x128xf32>
      %42 = arith.addf %41, %40 : vector<2x128xf32>
      %43 = arith.divf %41, %42 : vector<2x128xf32>
      %c0_31 = arith.constant 0 : index
      %c0_32 = arith.constant 0 : index
      %c0_33 = arith.constant 0 : index
      %44 = vector.load %arg10[%c0_31, %c0_32, %c0_33] : memref<2x2x128xf32, #tpu.memory_space<vmem>>, vector<1x2x128xf32>
      %45 = vector.shape_cast %44 : vector<1x2x128xf32> to vector<2x128xf32>
      %46 = arith.mulf %35, %45 : vector<2x128xf32>
      %47 = arith.mulf %29, %37 : vector<2x128xf32>
      %48 = arith.addf %46, %47 : vector<2x128xf32>
      %49 = math.tanh %48 : vector<2x128xf32>
      %50 = arith.mulf %43, %49 : vector<2x128xf32>
      %c0_34 = arith.constant 0 : index
      %c0_35 = arith.constant 0 : index
      %c0_36 = arith.constant 0 : index
      %51 = vector.load %arg9[%c0_34, %c0_35, %c0_36] : memref<2x2x128xf32, #tpu.memory_space<vmem>>, vector<1x2x128xf32>
      %52 = vector.shape_cast %51 : vector<1x2x128xf32> to vector<2x128xf32>
      %53 = vector.shape_cast %50 : vector<2x128xf32> to vector<1x2x128xf32>
      tpu.vector_store %arg9[%c0_34, %c0_35, %c0_36], %53 {strides = array<i32>} : memref<2x2x128xf32, #tpu.memory_space<vmem>>, vector<1x2x128xf32>,
      %c0_37 = arith.constant 0 : index
      %c0_38 = arith.constant 0 : index
      %c0_39 = arith.constant 0 : index
      %54 = vector.load %arg10[%c0_37, %c0_38, %c0_39] : memref<2x2x128xf32, #tpu.memory_space<vmem>>, vector<1x2x128xf32>
      %55 = vector.shape_cast %54 : vector<1x2x128xf32> to vector<2x128xf32>
      %56 = vector.shape_cast %48 : vector<2x128xf32> to vector<1x2x128xf32>
      tpu.vector_store %arg10[%c0_37, %c0_38, %c0_39], %56 {strides = array<i32>} : memref<2x2x128xf32, #tpu.memory_space<vmem>>, vector<1x2x128xf32>,
      %c1 = arith.constant 1 : index
      %c0_40 = arith.constant 0 : index
      %c0_41 = arith.constant 0 : index
      %57 = vector.load %arg9[%c1, %c0_40, %c0_41] : memref<2x2x128xf32, #tpu.memory_space<vmem>>, vector<1x2x128xf32>
      %58 = vector.shape_cast %57 : vector<1x2x128xf32> to vector<2x128xf32>
      %59 = tpu.concatenate %50, %58 in 1 : vector<2x128xf32>, vector<2x128xf32> -> vector<2x256xf32>
      %60 = arith.truncf %59 : vector<2x256xf32> to vector<2x256xbf16>
      %c1_42 = arith.constant 1 : index
      %c0_43 = arith.constant 0 : index
      %c0_44 = arith.constant 0 : index
      %61 = vector.load %arg2[%c1_42, %c0_43, %c0_44] : memref<2x256x512xbf16, #tpu.memory_space<vmem>>, vector<1x256x512xbf16>
      %62 = vector.shape_cast %61 : vector<1x256x512xbf16> to vector<256x512xbf16>
      %cst_45 = arith.constant dense<0.000000e+00> : vector<2x512xf32>
      %63 = tpu.matmul %60, %62, %cst_45 {dimension_numbers = #tpu.dot_dimension_numbers<[1], [0], [0], [1], [0, 0, 1, 1], [], []>} : vector<2x256xbf16>, vector<256x512xbf16>, vector<2x512xf32> -> vector<2x512xf32>
      %c1_46 = arith.constant 1 : index
      %c0_47 = arith.constant 0 : index
      %c0_48 = arith.constant 0 : index
      %64 = vector.load %arg3[%c1_46, %c0_47, %c0_48] : memref<2x1x512xf32, #tpu.memory_space<vmem>>, vector<1x1x512xf32>
      %65 = vector.shape_cast %64 : vector<1x1x512xf32> to vector<1x512xf32>
      %66 = vector.broadcast %65 : vector<1x512xf32> to vector<2x512xf32>
      %67 = arith.addf %63, %66 : vector<2x512xf32>
      %68 = vector.extract_strided_slice %67 {offsets = [0, 0], sizes = [2, 128], strides = [1, 1]} : vector<2x512xf32> to vector<2x128xf32>
      %69 = arith.negf %68 : vector<2x128xf32>
      %70 = math.exp %69 : vector<2x128xf32>
      %cst_49 = arith.constant 1.000000e+00 : f32
      %71 = vector.broadcast %cst_49 : f32 to vector<2x128xf32>
      %72 = arith.addf %71, %70 : vector<2x128xf32>
      %73 = arith.divf %71, %72 : vector<2x128xf32>
      %74 = vector.extract_strided_slice %67 {offsets = [0, 128], sizes = [2, 128], strides = [1, 1]} : vector<2x512xf32> to vector<2x128xf32>
      %75 = arith.negf %74 : vector<2x128xf32>
      %76 = math.exp %75 : vector<2x128xf32>
      %cst_50 = arith.constant 1.000000e+00 : f32
      %77 = vector.broadcast %cst_50 : f32 to vector<2x128xf32>
      %78 = arith.addf %77, %76 : vector<2x128xf32>
      %79 = arith.divf %77, %78 : vector<2x128xf32>
      %80 = vector.extract_strided_slice %67 {offsets = [0, 256], sizes = [2, 128], strides = [1, 1]} : vector<2x512xf32> to vector<2x128xf32>
      %81 = math.tanh %80 : vector<2x128xf32>
      %82 = vector.extract_strided_slice %67 {offsets = [0, 384], sizes = [2, 128], strides = [1, 1]} : vector<2x512xf32> to vector<2x128xf32>
      %83 = arith.negf %82 : vector<2x128xf32>
      %84 = math.exp %83 : vector<2x128xf32>
      %cst_51 = arith.constant 1.000000e+00 : f32
      %85 = vector.broadcast %cst_51 : f32 to vector<2x128xf32>
      %86 = arith.addf %85, %84 : vector<2x128xf32>
      %87 = arith.divf %85, %86 : vector<2x128xf32>
      %c1_52 = arith.constant 1 : index
      %c0_53 = arith.constant 0 : index
      %c0_54 = arith.constant 0 : index
      %88 = vector.load %arg10[%c1_52, %c0_53, %c0_54] : memref<2x2x128xf32, #tpu.memory_space<vmem>>, vector<1x2x128xf32>
      %89 = vector.shape_cast %88 : vector<1x2x128xf32> to vector<2x128xf32>
      %90 = arith.mulf %79, %89 : vector<2x128xf32>
      %91 = arith.mulf %73, %81 : vector<2x128xf32>
      %92 = arith.addf %90, %91 : vector<2x128xf32>
      %93 = math.tanh %92 : vector<2x128xf32>
      %94 = arith.mulf %87, %93 : vector<2x128xf32>
      %c1_55 = arith.constant 1 : index
      %c0_56 = arith.constant 0 : index
      %c0_57 = arith.constant 0 : index
      %95 = vector.load %arg9[%c1_55, %c0_56, %c0_57] : memref<2x2x128xf32, #tpu.memory_space<vmem>>, vector<1x2x128xf32>
      %96 = vector.shape_cast %95 : vector<1x2x128xf32> to vector<2x128xf32>
      %97 = vector.shape_cast %94 : vector<2x128xf32> to vector<1x2x128xf32>
      tpu.vector_store %arg9[%c1_55, %c0_56, %c0_57], %97 {strides = array<i32>} : memref<2x2x128xf32, #tpu.memory_space<vmem>>, vector<1x2x128xf32>,
      %c1_58 = arith.constant 1 : index
      %c0_59 = arith.constant 0 : index
      %c0_60 = arith.constant 0 : index
      %98 = vector.load %arg10[%c1_58, %c0_59, %c0_60] : memref<2x2x128xf32, #tpu.memory_space<vmem>>, vector<1x2x128xf32>
      %99 = vector.shape_cast %98 : vector<1x2x128xf32> to vector<2x128xf32>
      %100 = vector.shape_cast %92 : vector<2x128xf32> to vector<1x2x128xf32>
      tpu.vector_store %arg10[%c1_58, %c0_59, %c0_60], %100 {strides = array<i32>} : memref<2x2x128xf32, #tpu.memory_space<vmem>>, vector<1x2x128xf32>,
    }
    %c8_i32_6 = arith.constant 8 : i32
    %c0_7 = arith.constant 0 : index
    %c0_8 = arith.constant 0 : index
    %5 = vector.load %arg1[%c0_7, %c0_8] : memref<2x128xf32, #tpu.memory_space<vmem>>, vector<2x128xf32>
    %c0_9 = arith.constant 0 : index
    %c0_10 = arith.constant 0 : index
    %6 = vector.load %arg11[%c0_9, %c0_10] : memref<2x128xf32, #tpu.memory_space<vmem>>, vector<2x128xf32>
    tpu.vector_store %arg11[%c0_9, %c0_10], %5 {strides = array<i32>} : memref<2x128xf32, #tpu.memory_space<vmem>>, vector<2x128xf32>,
    %c0_i32_11 = arith.constant 0 : i32
    %c4_i32 = arith.constant 4 : i32
    %7 = arith.addi %c0_i32_11, %c4_i32 : i32
    %c1_i32_12 = arith.constant 1 : i32
    scf.for %arg12 = %c0_i32_11 to %7 step %c1_i32_12  : i32 {
      %c1_i32_14 = arith.constant 1 : i32
      %8 = arith.muli %arg12, %c1_i32_14 : i32
      %c0_i32_15 = arith.constant 0 : i32
      %9 = arith.addi %c0_i32_15, %8 : i32
      %c0_16 = arith.constant 0 : index
      %c0_17 = arith.constant 0 : index
      %10 = vector.load %arg11[%c0_16, %c0_17] : memref<2x128xf32, #tpu.memory_space<vmem>>, vector<2x128xf32>
      %c0_18 = arith.constant 0 : index
      %c0_19 = arith.constant 0 : index
      %c0_20 = arith.constant 0 : index
      %11 = vector.load %arg9[%c0_18, %c0_19, %c0_20] : memref<2x2x128xf32, #tpu.memory_space<vmem>>, vector<1x2x128xf32>
      %12 = vector.shape_cast %11 : vector<1x2x128xf32> to vector<2x128xf32>
      %13 = tpu.concatenate %10, %12 in 1 : vector<2x128xf32>, vector<2x128xf32> -> vector<2x256xf32>
      %14 = arith.truncf %13 : vector<2x256xf32> to vector<2x256xbf16>
      %c0_21 = arith.constant 0 : index
      %c0_22 = arith.constant 0 : index
      %c0_23 = arith.constant 0 : index
      %15 = vector.load %arg4[%c0_21, %c0_22, %c0_23] : memref<2x256x512xbf16, #tpu.memory_space<vmem>>, vector<1x256x512xbf16>
      %16 = vector.shape_cast %15 : vector<1x256x512xbf16> to vector<256x512xbf16>
      %cst_24 = arith.constant dense<0.000000e+00> : vector<2x512xf32>
      %17 = tpu.matmul %14, %16, %cst_24 {dimension_numbers = #tpu.dot_dimension_numbers<[1], [0], [0], [1], [0, 0, 1, 1], [], []>} : vector<2x256xbf16>, vector<256x512xbf16>, vector<2x512xf32> -> vector<2x512xf32>
      %c0_25 = arith.constant 0 : index
      %c0_26 = arith.constant 0 : index
      %c0_27 = arith.constant 0 : index
      %18 = vector.load %arg5[%c0_25, %c0_26, %c0_27] : memref<2x1x512xf32, #tpu.memory_space<vmem>>, vector<1x1x512xf32>
      %19 = vector.shape_cast %18 : vector<1x1x512xf32> to vector<1x512xf32>
      %20 = vector.broadcast %19 : vector<1x512xf32> to vector<2x512xf32>
      %21 = arith.addf %17, %20 : vector<2x512xf32>
      %22 = vector.extract_strided_slice %21 {offsets = [0, 0], sizes = [2, 128], strides = [1, 1]} : vector<2x512xf32> to vector<2x128xf32>
      %23 = arith.negf %22 : vector<2x128xf32>
      %24 = math.exp %23 : vector<2x128xf32>
      %cst_28 = arith.constant 1.000000e+00 : f32
      %25 = vector.broadcast %cst_28 : f32 to vector<2x128xf32>
      %26 = arith.addf %25, %24 : vector<2x128xf32>
      %27 = arith.divf %25, %26 : vector<2x128xf32>
      %28 = vector.extract_strided_slice %21 {offsets = [0, 128], sizes = [2, 128], strides = [1, 1]} : vector<2x512xf32> to vector<2x128xf32>
      %29 = arith.negf %28 : vector<2x128xf32>
      %30 = math.exp %29 : vector<2x128xf32>
      %cst_29 = arith.constant 1.000000e+00 : f32
      %31 = vector.broadcast %cst_29 : f32 to vector<2x128xf32>
      %32 = arith.addf %31, %30 : vector<2x128xf32>
      %33 = arith.divf %31, %32 : vector<2x128xf32>
      %34 = vector.extract_strided_slice %21 {offsets = [0, 256], sizes = [2, 128], strides = [1, 1]} : vector<2x512xf32> to vector<2x128xf32>
      %35 = math.tanh %34 : vector<2x128xf32>
      %36 = vector.extract_strided_slice %21 {offsets = [0, 384], sizes = [2, 128], strides = [1, 1]} : vector<2x512xf32> to vector<2x128xf32>
      %37 = arith.negf %36 : vector<2x128xf32>
      %38 = math.exp %37 : vector<2x128xf32>
      %cst_30 = arith.constant 1.000000e+00 : f32
      %39 = vector.broadcast %cst_30 : f32 to vector<2x128xf32>
      %40 = arith.addf %39, %38 : vector<2x128xf32>
      %41 = arith.divf %39, %40 : vector<2x128xf32>
      %c0_31 = arith.constant 0 : index
      %c0_32 = arith.constant 0 : index
      %c0_33 = arith.constant 0 : index
      %42 = vector.load %arg10[%c0_31, %c0_32, %c0_33] : memref<2x2x128xf32, #tpu.memory_space<vmem>>, vector<1x2x128xf32>
      %43 = vector.shape_cast %42 : vector<1x2x128xf32> to vector<2x128xf32>
      %44 = arith.mulf %33, %43 : vector<2x128xf32>
      %45 = arith.mulf %27, %35 : vector<2x128xf32>
      %46 = arith.addf %44, %45 : vector<2x128xf32>
      %47 = math.tanh %46 : vector<2x128xf32>
      %48 = arith.mulf %41, %47 : vector<2x128xf32>
      %c0_34 = arith.constant 0 : index
      %c0_35 = arith.constant 0 : index
      %c0_36 = arith.constant 0 : index
      %49 = vector.load %arg9[%c0_34, %c0_35, %c0_36] : memref<2x2x128xf32, #tpu.memory_space<vmem>>, vector<1x2x128xf32>
      %50 = vector.shape_cast %49 : vector<1x2x128xf32> to vector<2x128xf32>
      %51 = vector.shape_cast %48 : vector<2x128xf32> to vector<1x2x128xf32>
      tpu.vector_store %arg9[%c0_34, %c0_35, %c0_36], %51 {strides = array<i32>} : memref<2x2x128xf32, #tpu.memory_space<vmem>>, vector<1x2x128xf32>,
      %c0_37 = arith.constant 0 : index
      %c0_38 = arith.constant 0 : index
      %c0_39 = arith.constant 0 : index
      %52 = vector.load %arg10[%c0_37, %c0_38, %c0_39] : memref<2x2x128xf32, #tpu.memory_space<vmem>>, vector<1x2x128xf32>
      %53 = vector.shape_cast %52 : vector<1x2x128xf32> to vector<2x128xf32>
      %54 = vector.shape_cast %46 : vector<2x128xf32> to vector<1x2x128xf32>
      tpu.vector_store %arg10[%c0_37, %c0_38, %c0_39], %54 {strides = array<i32>} : memref<2x2x128xf32, #tpu.memory_space<vmem>>, vector<1x2x128xf32>,
      %c1 = arith.constant 1 : index
      %c0_40 = arith.constant 0 : index
      %c0_41 = arith.constant 0 : index
      %55 = vector.load %arg9[%c1, %c0_40, %c0_41] : memref<2x2x128xf32, #tpu.memory_space<vmem>>, vector<1x2x128xf32>
      %56 = vector.shape_cast %55 : vector<1x2x128xf32> to vector<2x128xf32>
      %57 = tpu.concatenate %48, %56 in 1 : vector<2x128xf32>, vector<2x128xf32> -> vector<2x256xf32>
      %58 = arith.truncf %57 : vector<2x256xf32> to vector<2x256xbf16>
      %c1_42 = arith.constant 1 : index
      %c0_43 = arith.constant 0 : index
      %c0_44 = arith.constant 0 : index
      %59 = vector.load %arg4[%c1_42, %c0_43, %c0_44] : memref<2x256x512xbf16, #tpu.memory_space<vmem>>, vector<1x256x512xbf16>
      %60 = vector.shape_cast %59 : vector<1x256x512xbf16> to vector<256x512xbf16>
      %cst_45 = arith.constant dense<0.000000e+00> : vector<2x512xf32>
      %61 = tpu.matmul %58, %60, %cst_45 {dimension_numbers = #tpu.dot_dimension_numbers<[1], [0], [0], [1], [0, 0, 1, 1], [], []>} : vector<2x256xbf16>, vector<256x512xbf16>, vector<2x512xf32> -> vector<2x512xf32>
      %c1_46 = arith.constant 1 : index
      %c0_47 = arith.constant 0 : index
      %c0_48 = arith.constant 0 : index
      %62 = vector.load %arg5[%c1_46, %c0_47, %c0_48] : memref<2x1x512xf32, #tpu.memory_space<vmem>>, vector<1x1x512xf32>
      %63 = vector.shape_cast %62 : vector<1x1x512xf32> to vector<1x512xf32>
      %64 = vector.broadcast %63 : vector<1x512xf32> to vector<2x512xf32>
      %65 = arith.addf %61, %64 : vector<2x512xf32>
      %66 = vector.extract_strided_slice %65 {offsets = [0, 0], sizes = [2, 128], strides = [1, 1]} : vector<2x512xf32> to vector<2x128xf32>
      %67 = arith.negf %66 : vector<2x128xf32>
      %68 = math.exp %67 : vector<2x128xf32>
      %cst_49 = arith.constant 1.000000e+00 : f32
      %69 = vector.broadcast %cst_49 : f32 to vector<2x128xf32>
      %70 = arith.addf %69, %68 : vector<2x128xf32>
      %71 = arith.divf %69, %70 : vector<2x128xf32>
      %72 = vector.extract_strided_slice %65 {offsets = [0, 128], sizes = [2, 128], strides = [1, 1]} : vector<2x512xf32> to vector<2x128xf32>
      %73 = arith.negf %72 : vector<2x128xf32>
      %74 = math.exp %73 : vector<2x128xf32>
      %cst_50 = arith.constant 1.000000e+00 : f32
      %75 = vector.broadcast %cst_50 : f32 to vector<2x128xf32>
      %76 = arith.addf %75, %74 : vector<2x128xf32>
      %77 = arith.divf %75, %76 : vector<2x128xf32>
      %78 = vector.extract_strided_slice %65 {offsets = [0, 256], sizes = [2, 128], strides = [1, 1]} : vector<2x512xf32> to vector<2x128xf32>
      %79 = math.tanh %78 : vector<2x128xf32>
      %80 = vector.extract_strided_slice %65 {offsets = [0, 384], sizes = [2, 128], strides = [1, 1]} : vector<2x512xf32> to vector<2x128xf32>
      %81 = arith.negf %80 : vector<2x128xf32>
      %82 = math.exp %81 : vector<2x128xf32>
      %cst_51 = arith.constant 1.000000e+00 : f32
      %83 = vector.broadcast %cst_51 : f32 to vector<2x128xf32>
      %84 = arith.addf %83, %82 : vector<2x128xf32>
      %85 = arith.divf %83, %84 : vector<2x128xf32>
      %c1_52 = arith.constant 1 : index
      %c0_53 = arith.constant 0 : index
      %c0_54 = arith.constant 0 : index
      %86 = vector.load %arg10[%c1_52, %c0_53, %c0_54] : memref<2x2x128xf32, #tpu.memory_space<vmem>>, vector<1x2x128xf32>
      %87 = vector.shape_cast %86 : vector<1x2x128xf32> to vector<2x128xf32>
      %88 = arith.mulf %77, %87 : vector<2x128xf32>
      %89 = arith.mulf %71, %79 : vector<2x128xf32>
      %90 = arith.addf %88, %89 : vector<2x128xf32>
      %91 = math.tanh %90 : vector<2x128xf32>
      %92 = arith.mulf %85, %91 : vector<2x128xf32>
      %c1_55 = arith.constant 1 : index
      %c0_56 = arith.constant 0 : index
      %c0_57 = arith.constant 0 : index
      %93 = vector.load %arg9[%c1_55, %c0_56, %c0_57] : memref<2x2x128xf32, #tpu.memory_space<vmem>>, vector<1x2x128xf32>
      %94 = vector.shape_cast %93 : vector<1x2x128xf32> to vector<2x128xf32>
      %95 = vector.shape_cast %92 : vector<2x128xf32> to vector<1x2x128xf32>
      tpu.vector_store %arg9[%c1_55, %c0_56, %c0_57], %95 {strides = array<i32>} : memref<2x2x128xf32, #tpu.memory_space<vmem>>, vector<1x2x128xf32>,
      %c1_58 = arith.constant 1 : index
      %c0_59 = arith.constant 0 : index
      %c0_60 = arith.constant 0 : index
      %96 = vector.load %arg10[%c1_58, %c0_59, %c0_60] : memref<2x2x128xf32, #tpu.memory_space<vmem>>, vector<1x2x128xf32>
      %97 = vector.shape_cast %96 : vector<1x2x128xf32> to vector<2x128xf32>
      %98 = vector.shape_cast %90 : vector<2x128xf32> to vector<1x2x128xf32>
      tpu.vector_store %arg10[%c1_58, %c0_59, %c0_60], %98 {strides = array<i32>} : memref<2x2x128xf32, #tpu.memory_space<vmem>>, vector<1x2x128xf32>,
      %99 = arith.truncf %92 : vector<2x128xf32> to vector<2x128xbf16>
      %c0_61 = arith.constant 0 : index
      %c0_62 = arith.constant 0 : index
      %100 = vector.load %arg6[%c0_61, %c0_62] : memref<128x128xbf16, #tpu.memory_space<vmem>>, vector<128x128xbf16>
      %cst_63 = arith.constant dense<0.000000e+00> : vector<2x128xf32>
      %101 = tpu.matmul %99, %100, %cst_63 {dimension_numbers = #tpu.dot_dimension_numbers<[1], [0], [0], [1], [0, 0, 1, 1], [], []>} : vector<2x128xbf16>, vector<128x128xbf16>, vector<2x128xf32> -> vector<2x128xf32>
      %c0_64 = arith.constant 0 : index
      %c0_65 = arith.constant 0 : index
      %102 = vector.load %arg7[%c0_64, %c0_65] : memref<1x128xf32, #tpu.memory_space<vmem>>, vector<1x128xf32>
      %103 = vector.broadcast %102 : vector<1x128xf32> to vector<2x128xf32>
      %104 = arith.addf %101, %103 : vector<2x128xf32>
      %105 = arith.index_cast %9 : i32 to index
      %c0_66 = arith.constant 0 : index
      %c0_67 = arith.constant 0 : index
      %106 = vector.load %arg8[%105, %c0_66, %c0_67] : memref<4x2x128xf32, #tpu.memory_space<vmem>>, vector<1x2x128xf32>
      %107 = vector.shape_cast %106 : vector<1x2x128xf32> to vector<2x128xf32>
      %108 = vector.shape_cast %104 : vector<2x128xf32> to vector<1x2x128xf32>
      tpu.vector_store %arg8[%105, %c0_66, %c0_67], %108 {strides = array<i32>} : memref<4x2x128xf32, #tpu.memory_space<vmem>>, vector<1x2x128xf32>,
      %c0_68 = arith.constant 0 : index
      %c0_69 = arith.constant 0 : index
      %109 = vector.load %arg11[%c0_68, %c0_69] : memref<2x128xf32, #tpu.memory_space<vmem>>, vector<2x128xf32>
      tpu.vector_store %arg11[%c0_68, %c0_69], %104 {strides = array<i32>} : memref<2x128xf32, #tpu.memory_space<vmem>>, vector<2x128xf32>,
    }
    %c4_i32_13 = arith.constant 4 : i32
    return
  }
}

</mosaic_0001>

<bundles_post_ra>
// kernel: bb_encoder_decoder_forward.1
= control target key start
LH: loop header
LB: loop body
LE: loop exit
PB: predicated region body
PF: predicated region fallthrough
CT: control target
= control target key end

     0   :  { %13 = vsyncpa [#allocation6], 0  ;;  %s3315_s0 = inlined_call_operand.vmem [shape: f32[8,2,128], index: 0, kind: input, shape index: {}]   ;;  %s3316_s1 = inlined_call_operand.vmem [shape: f32[2,128], index: 1, kind: input, shape index: {}]   ;;  %s3317_s2 = inlined_call_operand.hbm [shape: bf16[2,256,512], index: 2, kind: input, shape index: {}]   ;;  %s3318_s3 = inlined_call_operand.vmem [shape: f32[2,1,512], index: 3, kind: input, shape index: {}]   ;;  %s3319_s4 = inlined_call_operand.hbm [shape: bf16[2,256,512], index: 4, kind: input, shape index: {}]   ;;  %s3320_s5 = inlined_call_operand.vmem [shape: f32[2,1,512], index: 5, kind: input, shape index: {}]   ;;  %s3321_s6 = inlined_call_operand.vmem [shape: bf16[128,128], index: 6, kind: input, shape index: {}]   ;;  %s3322_s7 = inlined_call_operand.vmem [shape: f32[1,128], index: 7, kind: input, shape index: {}]   ;;  %s3323_s8 = inlined_call_operand.vmem [shape: f32[4,2,128], index: 8, kind: output, shape index: {}]  }
   0x1   :  { %14 = vsyncpa [#allocation8], 0  ;;  %s3149_s27 = smov [#allocation5]   ;;  %s3085_s9 = scalar_lea.hbm %s3317_s2, 16384 }
   0x2   :  { %s24_s28 = sshll.u32 %s3149_s27, 4  ;;  %p3086_p0 = scmp.ne.s32.totalorder %s3317_s2, %s3085_s9  ;;  %s25_s28 = int_to_ptr.vmem [resolvable:$true] %s24_s28 }
   0x3   :  { %p3089_p1 = scmp.lt.u32.totalorder %s3085_s9, %s3317_s2 }
   0x5   :  { %p3091_p2 = pnand %p3089_p1, %p3086_p0 }
   0x7   :  { %3094 = shalt.err (!%p3091_p2)
}
   0x8   :  { %s3095_s14 = scalar_lea.vmem %s25_s28, 16384  ;;  %p3100_p4 = scmp.lt.s32.totalorder %s25_s28, %s25_s28 }
   0x9   :  { %p3096_p3 = scmp.ne.s32.totalorder %s25_s28, %s3095_s14  ;;  %p3101_p5 = scmp.lt.s32.totalorder %s3095_s14, %s3095_s14 }
   0xb   :  { %p3102_p6 = por %p3101_p5, %p3100_p4 }
   0xd   :  { %p3103_p7 = pnand %p3102_p6, %p3096_p3 }
   0xf   :  { %3106 = shalt.err (!%p3103_p7)
}
  0x10   :  { %s3150_s15 = smov 256   ;;  %s3151_s16 = smov 16  }
  0x11   :  { %30 = dma.hbm_to_vmem [thread:$0]  %s3317_s2, 16384, %s25_s28, [#allocation6], %s3150_s15, %s3150_s15, %s3151_s16  }
  0x12   :  { %s3152_s19 = smov [#allocation7]   ;;  %s3107_s23 = scalar_lea.hbm %s3319_s4, 16384 }
  0x13   :  { %s38_s20 = sshll.u32 %s3152_s19, 4  ;;  %p3108_p8 = scmp.ne.s32.totalorder %s3319_s4, %s3107_s23  ;;  %s39_s20 = int_to_ptr.vmem [resolvable:$true] %s38_s20 }
  0x14   :  { %p3111_p9 = scmp.lt.u32.totalorder %s3107_s23, %s3319_s4 }
  0x16   :  { %p3113_p10 = pnand %p3111_p9, %p3108_p8 }
  0x18   :  { %3116 = shalt.err (!%p3113_p10)
}
  0x19   :  { %s3117_s29 = scalar_lea.vmem %s39_s20, 16384  ;;  %p3122_p12 = scmp.lt.s32.totalorder %s39_s20, %s39_s20 }
  0x1a   :  { %p3118_p11 = scmp.ne.s32.totalorder %s39_s20, %s3117_s29  ;;  %p3123_p13 = scmp.lt.s32.totalorder %s3117_s29, %s3117_s29 }
  0x1c   :  { %p3124_p0 = por %p3123_p13, %p3122_p12 }
  0x1e   :  { %p3125_p1 = pnand %p3124_p0, %p3118_p11 }
  0x20   :  { %3128 = shalt.err (!%p3125_p1)
}
  0x21   :  { %44 = dma.hbm_to_vmem [thread:$0]  %s3319_s4, 16384, %s39_s20, [#allocation8], %s3150_s15, %s3150_s15, %s3151_s16  }
  0x22   :  { %3137 = dma.done.wait [#allocation6], 16384  }
  0x23   :  { %3138 = vsyncadd [#allocation6], 4294950912 }
  0x24   :  { %3139 = dma.done.wait [#allocation8], 16384  }
  0x25   :  { %3140 = vsyncadd [#allocation8], 4294950912  ;;  %v3153_v0 = vmov 0.0   ;;  %s3225_s30 = smov 0  }
  0x26   :  { %58 = vst [vmem:[#allocation2] sm:$0x3] %v3153_v0  ;;  %59 = vst [vmem:[#allocation2 + $0x2] sm:$0x3] %v3153_v0 }
  0x27   :  { %60 = vst [vmem:[#allocation3] sm:$0x3] %v3153_v0  ;;  %61 = vst [vmem:[#allocation3 + $0x2] sm:$0x3] %v3153_v0 }
  0x28 LB: > { %v2629_v1 = vld [vmem:[#allocation5 + $0x4] ss:$16 sps:$4 sm:$0xff]   ;;  %v2631_v2 = vld [vmem:[#allocation5] ss:$16 sps:$4 sm:$0xff]   ;;  %v2640_v6 = vld [vmem:[#allocation5 + $0xc] ss:$16 sps:$4 sm:$0xff]   ;;  %s3143_s30 = sphi %s3225_s30, %s67_s30  }
  0x29   : > { %480 = vmatprep.subr.bf16.mxu0 %v2629_v1  ;;  %v2632_v3 = vld [vmem:[#allocation5 + $0x24] ss:$16 sps:$4 sm:$0xff]   ;;  %v2634_v4 = vld [vmem:[#allocation5 + $0x20] ss:$16 sps:$4 sm:$0xff]   ;;  %v2643_v7 = vld [vmem:[#allocation5 + $0x8] ss:$16 sps:$4 sm:$0xff]   ;;  %521 = vmatprep.subr.bf16.mxu1 %v2640_v6 }
  0x2a   : > { %481 = vmatpush1.bf16.msra.mxu0 %v2631_v2  ;;  %v2635_v5 = vld [vmem:[#allocation5 + $0x44] ss:$16 sps:$4 sm:$0xff]   ;;  %v2637_v8 = vld [vmem:[#allocation5 + $0x40] ss:$16 sps:$4 sm:$0xff]   ;;  %522 = vmatpush1.bf16.msra.mxu1 %v2643_v7  ;;  %v2646_v10 = vld [vmem:[#allocation5 + $0x2c] ss:$16 sps:$4 sm:$0xff]  }
  0x2b   : > { %482 = vmatprep.subr.bf16.mxu0 %v2632_v3  ;;  %v2638_v9 = vld [vmem:[#allocation5 + $0x64] ss:$16 sps:$4 sm:$0xff]   ;;  %v2649_v11 = vld [vmem:[#allocation5 + $0x28] ss:$16 sps:$4 sm:$0xff]   ;;  %523 = vmatprep.subr.bf16.mxu1 %v2646_v10  ;;  %v2642_v12 = vld [vmem:[#allocation5 + $0x60] ss:$16 sps:$4 sm:$0xff]  }
  0x2c   : > { %v2644_v13 = vld [vmem:[#allocation5 + $0x84] ss:$16 sps:$4 sm:$0xff]   ;;  %v2652_v14 = vld [vmem:[#allocation5 + $0x4c] ss:$16 sps:$4 sm:$0xff]   ;;  %v2655_v15 = vld [vmem:[#allocation5 + $0x48] ss:$16 sps:$4 sm:$0xff]  }
  0x2d   : > { %v2658_v16 = vld [vmem:[#allocation5 + $0x6c] ss:$16 sps:$4 sm:$0xff]   ;;  %v2648_v17 = vld [vmem:[#allocation5 + $0x80] ss:$16 sps:$4 sm:$0xff]   ;;  %v2650_v18 = vld [vmem:[#allocation5 + $0xa4] ss:$16 sps:$4 sm:$0xff]  }
  0x2e   : > { %483 = vmatpush1.bf16.msra.mxu0 %v2634_v4  ;;  %524 = vmatpush1.bf16.msra.mxu1 %v2649_v11  ;;  %v2661_v19 = vld [vmem:[#allocation5 + $0x68] ss:$16 sps:$4 sm:$0xff]   ;;  %v2664_v20 = vld [vmem:[#allocation5 + $0x8c] ss:$16 sps:$4 sm:$0xff]   ;;  %v2654_v21 = vld [vmem:[#allocation5 + $0xa0] ss:$16 sps:$4 sm:$0xff]  }
  0x2f   : > { %484 = vmatprep.subr.bf16.mxu0 %v2635_v5  ;;  %525 = vmatprep.subr.bf16.mxu1 %v2652_v14  ;;  %v2656_v22 = vld [vmem:[#allocation5 + $0xc4] ss:$16 sps:$4 sm:$0xff]   ;;  %v2667_v23 = vld [vmem:[#allocation5 + $0x88] ss:$16 sps:$4 sm:$0xff]   ;;  %v2670_v24 = vld [vmem:[#allocation5 + $0xac] ss:$16 sps:$4 sm:$0xff]  }
  0x30   : > { %v2660_v25 = vld [vmem:[#allocation5 + $0xc0] ss:$16 sps:$4 sm:$0xff]   ;;  %v2662_v26 = vld [vmem:[#allocation5 + $0xe4] ss:$16 sps:$4 sm:$0xff]   ;;  %v2673_v27 = vld [vmem:[#allocation5 + $0xa8] ss:$16 sps:$4 sm:$0xff]  }
  0x31   : > { %v2676_v28 = vld [vmem:[#allocation5 + $0xcc] ss:$16 sps:$4 sm:$0xff]   ;;  %v2666_v29 = vld [vmem:[#allocation5 + $0xe0] ss:$16 sps:$4 sm:$0xff]   ;;  %v2668_v30 = vld [vmem:[#allocation5 + $0x104] ss:$16 sps:$4 sm:$0xff]  }
  0x32   : > { %485 = vmatpush1.bf16.msra.mxu0 %v2637_v8  ;;  %526 = vmatpush1.bf16.msra.mxu1 %v2655_v15  ;;  %v2679_v31 = vld [vmem:[#allocation5 + $0xc8] ss:$16 sps:$4 sm:$0xff]   ;;  %v2682_v32 = vld [vmem:[#allocation5 + $0xec] ss:$16 sps:$4 sm:$0xff]   ;;  %v2672_v33 = vld [vmem:[#allocation5 + $0x100] ss:$16 sps:$4 sm:$0xff]  }
  0x33   : > { %486 = vmatprep.subr.bf16.mxu0 %v2638_v9  ;;  %527 = vmatprep.subr.bf16.mxu1 %v2658_v16  ;;  %v2674_v34 = vld [vmem:[#allocation5 + $0x124] ss:$16 sps:$4 sm:$0xff]   ;;  %v2685_v35 = vld [vmem:[#allocation5 + $0xe8] ss:$16 sps:$4 sm:$0xff]   ;;  %v2688_v36 = vld [vmem:[#allocation5 + $0x10c] ss:$16 sps:$4 sm:$0xff]  }
  0x34   : > { %v2678_v37 = vld [vmem:[#allocation5 + $0x120] ss:$16 sps:$4 sm:$0xff]   ;;  %v2680_v38 = vld [vmem:[#allocation5 + $0x144] ss:$16 sps:$4 sm:$0xff]   ;;  %v2691_v39 = vld [vmem:[#allocation5 + $0x108] ss:$16 sps:$4 sm:$0xff]  }
  0x35   : > { %v2694_v40 = vld [vmem:[#allocation5 + $0x12c] ss:$16 sps:$4 sm:$0xff]   ;;  %v71_v41 = vld [vmem:[#allocation2] sm:$0x3]  ;;  %v2684_v42 = vld [vmem:[#allocation5 + $0x140] ss:$16 sps:$4 sm:$0xff]  }
  0x36   : > { %487 = vmatpush1.bf16.msra.mxu0 %v2642_v12  ;;  %528 = vmatpush1.bf16.msra.mxu1 %v2661_v19  ;;  %v73_v43 = vpack.c.bf16 %v71_v41, %v71_v41  ;;  %v2686_v44 = vld [vmem:[#allocation5 + $0x164] ss:$16 sps:$4 sm:$0xff]   ;;  %v2697_v45 = vld [vmem:[#allocation5 + $0x128] ss:$16 sps:$4 sm:$0xff]   ;;  %v2700_v46 = vld [vmem:[#allocation5 + $0x14c] ss:$16 sps:$4 sm:$0xff]  }
  0x37   : > { %488 = vmatprep.subr.bf16.mxu0 %v2644_v13  ;;  %529 = vmatprep.subr.bf16.mxu1 %v2664_v20  ;;  %v2690_v47 = vld [vmem:[#allocation5 + $0x160] ss:$16 sps:$4 sm:$0xff]   ;;  %v2692_v48 = vld [vmem:[#allocation5 + $0x184] ss:$16 sps:$4 sm:$0xff]   ;;  %v2703_v49 = vld [vmem:[#allocation5 + $0x148] ss:$16 sps:$4 sm:$0xff]  }
  0x38   : > { %512 = vmatprep.mubr.bf16.mxu0 %v73_v43  ;;  %553 = vmatprep.mubr.bf16.mxu1 %v73_v43  ;;  %v2706_v50 = vld [vmem:[#allocation5 + $0x16c] ss:$16 sps:$4 sm:$0xff]   ;;  %v2696_v51 = vld [vmem:[#allocation5 + $0x180] ss:$16 sps:$4 sm:$0xff]   ;;  %v2698_v52 = vld [vmem:[#allocation5 + $0x1a4] ss:$16 sps:$4 sm:$0xff]  }
  0x39   : > { %v2709_v53 = vld [vmem:[#allocation5 + $0x168] ss:$16 sps:$4 sm:$0xff]   ;;  %v2712_v54 = vld [vmem:[#allocation5 + $0x18c] ss:$16 sps:$4 sm:$0xff]   ;;  %v2702_v55 = vld [vmem:[#allocation5 + $0x1a0] ss:$16 sps:$4 sm:$0xff]  }
  0x3a   : > { %489 = vmatpush1.bf16.msra.mxu0 %v2648_v17  ;;  %530 = vmatpush1.bf16.msra.mxu1 %v2667_v23  ;;  %s2296_s4 = sshll.u32 %s3143_s30, 1  ;;  %v2704_v56 = vld [vmem:[#allocation5 + $0x1c4] ss:$16 sps:$4 sm:$0xff]   ;;  %v2715_v57 = vld [vmem:[#allocation5 + $0x188] ss:$16 sps:$4 sm:$0xff]   ;;  %s67_s30 = sadd.s32 1, %s3143_s30  }
  0x3b   : > { %490 = vmatprep.subr.bf16.mxu0 %v2650_v18  ;;  %531 = vmatprep.subr.bf16.mxu1 %v2670_v24  ;;  %v2708_v58 = vld [vmem:[#allocation5 + $0x1c0] ss:$16 sps:$4 sm:$0xff]   ;;  %v2716_v59 = vld [vmem:[#allocation5 + $0x1ac] ss:$16 sps:$4 sm:$0xff]   ;;  %v2710_v60 = vld [vmem:[#allocation5 + $0x1e4] ss:$16 sps:$4 sm:$0xff]   ;;  %s69_s11 = scalar_lea.vmem %s3315_s0, %s2296_s4 }
  0x3c   : > { %v2718_v61 = vld [vmem:[#allocation5 + $0x1a8] ss:$16 sps:$4 sm:$0xff]   ;;  %v2719_v62 = vld [vmem:[#allocation5 + $0x1cc] ss:$16 sps:$4 sm:$0xff]   ;;  %v2714_v63 = vld [vmem:[#allocation5 + $0x1e0] ss:$16 sps:$4 sm:$0xff]  }
  0x3d   : > { %v70_v0 = vld [vmem:[%s69_s11] sm:$0x3]  ;;  %v2721_v1 = vld [vmem:[#allocation5 + $0x1c8] ss:$16 sps:$4 sm:$0xff]   ;;  %v2722_v3 = vld [vmem:[#allocation5 + $0x1ec] ss:$16 sps:$4 sm:$0xff]  }
  0x3e   : > { %491 = vmatpush1.bf16.msra.mxu0 %v2654_v21  ;;  %532 = vmatpush1.bf16.msra.mxu1 %v2673_v27  ;;  %v2727_v2 = vld [vmem:[#allocation5 + $0x204] ss:$16 sps:$4 sm:$0xff]   ;;  %v2725_v4 = vld [vmem:[#allocation5 + $0x200] ss:$16 sps:$4 sm:$0xff]   ;;  %v72_v5 = vpack.c.bf16 %v70_v0, %v70_v0  ;;  %v2724_v6 = vld [vmem:[#allocation5 + $0x1e8] ss:$16 sps:$4 sm:$0xff]  }
  0x3f   : > { %492 = vmatprep.subr.bf16.mxu0 %v2656_v22  ;;  %533 = vmatprep.subr.bf16.mxu1 %v2676_v28  ;;  %v2733_v7 = vld [vmem:[#allocation5 + $0x224] ss:$16 sps:$4 sm:$0xff]   ;;  %v2730_v8 = vld [vmem:[#allocation5 + $0x20c] ss:$16 sps:$4 sm:$0xff]   ;;  %v2731_v9 = vld [vmem:[#allocation5 + $0x220] ss:$16 sps:$4 sm:$0xff]  }
  0x40   : > { %v2728_v10 = vld [vmem:[#allocation5 + $0x208] ss:$16 sps:$4 sm:$0xff]   ;;  %v2739_v11 = vld [vmem:[#allocation5 + $0x244] ss:$16 sps:$4 sm:$0xff]   ;;  %v2736_v12 = vld [vmem:[#allocation5 + $0x22c] ss:$16 sps:$4 sm:$0xff]  }
  0x41   : > { %v2737_v13 = vld [vmem:[#allocation5 + $0x240] ss:$16 sps:$4 sm:$0xff]   ;;  %v2734_v14 = vld [vmem:[#allocation5 + $0x228] ss:$16 sps:$4 sm:$0xff]   ;;  %v2745_v15 = vld [vmem:[#allocation5 + $0x264] ss:$16 sps:$4 sm:$0xff]  }
  0x42   : > { %493 = vmatpush1.bf16.msra.mxu0 %v2660_v25  ;;  %534 = vmatpush1.bf16.msra.mxu1 %v2679_v31  ;;  %v2742_v16 = vld [vmem:[#allocation5 + $0x24c] ss:$16 sps:$4 sm:$0xff]   ;;  %v2743_v17 = vld [vmem:[#allocation5 + $0x260] ss:$16 sps:$4 sm:$0xff]   ;;  %v2740_v18 = vld [vmem:[#allocation5 + $0x248] ss:$16 sps:$4 sm:$0xff]  }
  0x43   : > { %494 = vmatprep.subr.bf16.mxu0 %v2662_v26  ;;  %535 = vmatprep.subr.bf16.mxu1 %v2682_v32  ;;  %v2748_v19 = vld [vmem:[#allocation5 + $0x26c] ss:$16 sps:$4 sm:$0xff]   ;;  %v2746_v20 = vld [vmem:[#allocation5 + $0x268] ss:$16 sps:$4 sm:$0xff]   ;;  %v2751_v21 = vld [vmem:[#allocation5 + $0x284] ss:$16 sps:$4 sm:$0xff]  }
  0x44   : > { %v2754_v22 = vld [vmem:[#allocation5 + $0x28c] ss:$16 sps:$4 sm:$0xff]   ;;  %v2749_v23 = vld [vmem:[#allocation5 + $0x280] ss:$16 sps:$4 sm:$0xff]   ;;  %v2752_v24 = vld [vmem:[#allocation5 + $0x288] ss:$16 sps:$4 sm:$0xff]  }
  0x45   : > { %v2757_v25 = vld [vmem:[#allocation5 + $0x2a4] ss:$16 sps:$4 sm:$0xff]   ;;  %v2760_v26 = vld [vmem:[#allocation5 + $0x2ac] ss:$16 sps:$4 sm:$0xff]   ;;  %v2755_v27 = vld [vmem:[#allocation5 + $0x2a0] ss:$16 sps:$4 sm:$0xff]  }
  0x46   : > { %495 = vmatpush1.bf16.msra.mxu0 %v2666_v29  ;;  %536 = vmatpush1.bf16.msra.mxu1 %v2685_v35  ;;  %v2758_v28 = vld [vmem:[#allocation5 + $0x2a8] ss:$16 sps:$4 sm:$0xff]   ;;  %v2763_v29 = vld [vmem:[#allocation5 + $0x2c4] ss:$16 sps:$4 sm:$0xff]   ;;  %v2761_v31 = vld [vmem:[#allocation5 + $0x2c0] ss:$16 sps:$4 sm:$0xff]  }
  0x47   : > { %496 = vmatprep.subr.bf16.mxu0 %v2668_v30  ;;  %537 = vmatprep.subr.bf16.mxu1 %v2688_v36  ;;  %v2766_v30 = vld [vmem:[#allocation5 + $0x2cc] ss:$16 sps:$4 sm:$0xff]   ;;  %v2764_v32 = vld [vmem:[#allocation5 + $0x2c8] ss:$16 sps:$4 sm:$0xff]   ;;  %v2767_v35 = vld [vmem:[#allocation5 + $0x2e0] ss:$16 sps:$4 sm:$0xff]  }
  0x48   : > { %v2770_v36 = vld [vmem:[#allocation5 + $0x2e8] ss:$16 sps:$4 sm:$0xff]   ;;  %v2781_v41 = vld [vmem:[#allocation5 + $0x324] ss:$16 sps:$4 sm:$0xff]   ;;  %v2779_v43 = vld [vmem:[#allocation5 + $0x320] ss:$16 sps:$4 sm:$0xff]  }
  0x49   : > { %v2812_v0 = vld [vmem:[#allocation5 + $0x3c8] ss:$16 sps:$4 sm:$0xff]   ;;  %p64_p2 = scmp.ge.s32.totalorder %s67_s30, 8  }
  0x4a   : > { %497 = vmatpush1.bf16.msra.mxu0 %v2672_v33  ;;  %538 = vmatpush1.bf16.msra.mxu1 %v2691_v39  ;;  %v2769_v33 = vld [vmem:[#allocation5 + $0x2e4] ss:$16 sps:$4 sm:$0xff]   ;;  %v2773_v39 = vld [vmem:[#allocation5 + $0x300] ss:$16 sps:$4 sm:$0xff]   ;;  %s3262_s18 = smov (%p64_p2), 0  }
  0x4b   : > { %498 = vmatprep.subr.bf16.mxu0 %v2674_v34  ;;  %539 = vmatprep.subr.bf16.mxu1 %v2694_v40  ;;  %v2772_v34 = vld [vmem:[#allocation5 + $0x2ec] ss:$16 sps:$4 sm:$0xff]   ;;  %v2776_v40 = vld [vmem:[#allocation5 + $0x308] ss:$16 sps:$4 sm:$0xff]  }
  0x4e   : > { %499 = vmatpush1.bf16.msra.mxu0 %v2678_v37  ;;  %540 = vmatpush1.bf16.msra.mxu1 %v2697_v45  ;;  %v2775_v37 = vld [vmem:[#allocation5 + $0x304] ss:$16 sps:$4 sm:$0xff]  }
  0x4f   : > { %500 = vmatprep.subr.bf16.mxu0 %v2680_v38  ;;  %541 = vmatprep.subr.bf16.mxu1 %v2700_v46  ;;  %v2778_v38 = vld [vmem:[#allocation5 + $0x30c] ss:$16 sps:$4 sm:$0xff]   ;;  %v2787_v45 = vld [vmem:[#allocation5 + $0x344] ss:$16 sps:$4 sm:$0xff]  }
  0x50   : > { %v2790_v46 = vld [vmem:[#allocation5 + $0x34c] ss:$16 sps:$4 sm:$0xff]  }
  0x52   : > { %501 = vmatpush1.bf16.msra.mxu0 %v2684_v42  ;;  %542 = vmatpush1.bf16.msra.mxu1 %v2703_v49  ;;  %v2784_v42 = vld [vmem:[#allocation5 + $0x32c] ss:$16 sps:$4 sm:$0xff]   ;;  %v2793_v49 = vld [vmem:[#allocation5 + $0x364] ss:$16 sps:$4 sm:$0xff]  }
  0x53   : > { %502 = vmatprep.subr.bf16.mxu0 %v2686_v44  ;;  %543 = vmatprep.subr.bf16.mxu1 %v2706_v50  ;;  %v2782_v44 = vld [vmem:[#allocation5 + $0x328] ss:$16 sps:$4 sm:$0xff]   ;;  %v2796_v50 = vld [vmem:[#allocation5 + $0x36c] ss:$16 sps:$4 sm:$0xff]  }
  0x56   : > { %503 = vmatpush1.bf16.msra.mxu0 %v2690_v47  ;;  %544 = vmatpush1.bf16.msra.mxu1 %v2709_v53  ;;  %v2785_v47 = vld [vmem:[#allocation5 + $0x340] ss:$16 sps:$4 sm:$0xff]   ;;  %v2799_v53 = vld [vmem:[#allocation5 + $0x384] ss:$16 sps:$4 sm:$0xff]  }
  0x57   : > { %504 = vmatprep.subr.bf16.mxu0 %v2692_v48  ;;  %545 = vmatprep.subr.bf16.mxu1 %v2712_v54  ;;  %v2788_v48 = vld [vmem:[#allocation5 + $0x348] ss:$16 sps:$4 sm:$0xff]   ;;  %v2802_v54 = vld [vmem:[#allocation5 + $0x38c] ss:$16 sps:$4 sm:$0xff]  }
  0x5a   : > { %505 = vmatpush1.bf16.msra.mxu0 %v2696_v51  ;;  %546 = vmatpush1.bf16.msra.mxu1 %v2715_v57  ;;  %v2791_v51 = vld [vmem:[#allocation5 + $0x360] ss:$16 sps:$4 sm:$0xff]  }
  0x5b   : > { %506 = vmatprep.subr.bf16.mxu0 %v2698_v52  ;;  %547 = vmatprep.subr.bf16.mxu1 %v2716_v59  ;;  %v2794_v52 = vld [vmem:[#allocation5 + $0x368] ss:$16 sps:$4 sm:$0xff]   ;;  %v2803_v57 = vld [vmem:[#allocation5 + $0x3a0] ss:$16 sps:$4 sm:$0xff]  }
  0x5c   : > { %v2806_v59 = vld [vmem:[#allocation5 + $0x3a8] ss:$16 sps:$4 sm:$0xff]  }
  0x5e   : > { %507 = vmatpush1.bf16.msra.mxu0 %v2702_v55  ;;  %548 = vmatpush1.bf16.msra.mxu1 %v2718_v61  ;;  %v2797_v55 = vld [vmem:[#allocation5 + $0x380] ss:$16 sps:$4 sm:$0xff]   ;;  %v2811_v61 = vld [vmem:[#allocation5 + $0x3c4] ss:$16 sps:$4 sm:$0xff]  }
  0x5f   : > { %508 = vmatprep.subr.bf16.mxu0 %v2704_v56  ;;  %549 = vmatprep.subr.bf16.mxu1 %v2719_v62  ;;  %v2800_v56 = vld [vmem:[#allocation5 + $0x388] ss:$16 sps:$4 sm:$0xff]   ;;  %v2814_v62 = vld [vmem:[#allocation5 + $0x3cc] ss:$16 sps:$4 sm:$0xff]  }
  0x62   : > { %509 = vmatpush1.bf16.msra.mxu0 %v2708_v58  ;;  %550 = vmatpush1.bf16.msra.mxu1 %v2721_v1  ;;  %v2805_v58 = vld [vmem:[#allocation5 + $0x3a4] ss:$16 sps:$4 sm:$0xff]   ;;  %v590_v1 = vld [vmem:[#allocation2 + $0x2] sm:$0x3] }
  0x63   : > { %510 = vmatprep.subr.bf16.mxu0 %v2710_v60  ;;  %551 = vmatprep.subr.bf16.mxu1 %v2722_v3  ;;  %v2808_v60 = vld [vmem:[#allocation5 + $0x3ac] ss:$16 sps:$4 sm:$0xff]  }
  0x64   : > { %v2820_v3 = vld [vmem:[#allocation5 + $0x3ec] ss:$16 sps:$4 sm:$0xff]  }
  0x66   : > { %511 = vmatpush1.bf16.msra.mxu0 %v2714_v63  ;;  %552 = vmatpush1.bf16.msra.mxu1 %v2724_v6  ;;  %v2809_v63 = vld [vmem:[#allocation5 + $0x3c0] ss:$16 sps:$4 sm:$0xff]   ;;  %v2818_v6 = vld [vmem:[#allocation5 + $0x3e8] ss:$16 sps:$4 sm:$0xff]  }
  0x67   : > { %1001 = vmatprep.subr.bf16.mxu0 %v2727_v2  ;;  %1042 = vmatprep.subr.bf16.mxu1 %v2730_v8  ;;  %v2817_v2 = vld [vmem:[#allocation5 + $0x3e4] ss:$16 sps:$4 sm:$0xff]  }
  0x69   : > { %513 = vmatmul.mubr.bf16.vlgmr.msra.gmra.mrb[0].mxu0 %v72_v5  ;;  %554 = vmatmul.mubr.bf16.vlgmr.msra.gmra.mrb[0].mxu1 %v72_v5  ;;  %v2815_v5 = vld [vmem:[#allocation5 + $0x3e0] ss:$16 sps:$4 sm:$0xff]  }
  0x6a   : > { %1002 = vmatpush1.bf16.msra.mxu0 %v2725_v4  ;;  %1043 = vmatpush1.bf16.msra.mxu1 %v2728_v10  ;;  %v592_v4 = vpack.c.bf16 %v590_v1, %v590_v1  ;;  %v138_v10 = vld [vmem:[%s3318_s3] sm:$0xf] }
  0x6b   : > { %1003 = vmatprep.subr.bf16.mxu0 %v2733_v7  ;;  %1044 = vmatprep.subr.bf16.mxu1 %v2736_v12  ;;  %v140_v7 = vlaneseq }
  0x6c   : > { %1033 = vmatprep.mubr.bf16.mxu0 %v592_v4  ;;  %1074 = vmatprep.mubr.bf16.mxu1 %v592_v4 }
  0x6d   : > { %v141_v8 = vshrl.u32 %v140_v7, 7 }
  0x6e   : > { %1004 = vmatpush1.bf16.msra.mxu0 %v2731_v9  ;;  %1045 = vmatpush1.bf16.msra.mxu1 %v2734_v14 }
  0x6f   : > { %1005 = vmatprep.subr.bf16.mxu0 %v2739_v11  ;;  %1046 = vmatprep.subr.bf16.mxu1 %v2742_v16  ;;  %v3234_v9 = vsub.s32 0, %v141_v8  ;;  %v3239_v11 = vsub.s32 1, %v141_v8  ;;  %v3243_v14 = vsub.s32 3, %v141_v8 }
  0x71   : > { %v143_v12 = vrot.slane %v138_v10, %v3234_v9 }
  0x72   : > { %1006 = vmatpush1.bf16.msra.mxu0 %v2737_v13  ;;  %1047 = vmatpush1.bf16.msra.mxu1 %v2740_v18  ;;  %v147_v13 = vrot.slane %v138_v10, %v3239_v11 }
  0x73   : > { %1007 = vmatprep.subr.bf16.mxu0 %v2745_v15  ;;  %1048 = vmatprep.subr.bf16.mxu1 %v2748_v19 }
  0x76   : > { %1008 = vmatpush1.bf16.msra.mxu0 %v2743_v17  ;;  %1049 = vmatpush1.bf16.msra.mxu1 %v2746_v20 }
  0x77   : > { %1009 = vmatprep.subr.bf16.mxu0 %v2751_v21  ;;  %1050 = vmatprep.subr.bf16.mxu1 %v2754_v22  ;;  %v155_v22 = vrot.slane %v138_v10, %v3243_v14 }
  0x7a   : > { %1010 = vmatpush1.bf16.msra.mxu0 %v2749_v23  ;;  %1051 = vmatpush1.bf16.msra.mxu1 %v2752_v24  ;;  %v3246_v24 = vsub.s32 2, %v141_v8 }
  0x7b   : > { %1011 = vmatprep.subr.bf16.mxu0 %v2757_v25  ;;  %1052 = vmatprep.subr.bf16.mxu1 %v2760_v26 }
  0x7e   : > { %1012 = vmatpush1.bf16.msra.mxu0 %v2755_v27  ;;  %1053 = vmatpush1.bf16.msra.mxu1 %v2758_v28 }
  0x7f   : > { %1013 = vmatprep.subr.bf16.mxu0 %v2763_v29  ;;  %1054 = vmatprep.subr.bf16.mxu1 %v2766_v30  ;;  %v151_v29 = vrot.slane %v138_v10, %v3246_v24 }
  0x82   : > { %1014 = vmatpush1.bf16.msra.mxu0 %v2761_v31  ;;  %1055 = vmatpush1.bf16.msra.mxu1 %v2764_v32 }
  0x83   : > { %1015 = vmatprep.subr.bf16.mxu0 %v2769_v33  ;;  %1056 = vmatprep.subr.bf16.mxu1 %v2772_v34 }
  0x86   : > { %1016 = vmatpush1.bf16.msra.mxu0 %v2767_v35  ;;  %1057 = vmatpush1.bf16.msra.mxu1 %v2770_v36 }
  0x87   : > { %1017 = vmatprep.subr.bf16.mxu0 %v2775_v37  ;;  %1058 = vmatprep.subr.bf16.mxu1 %v2778_v38 }
  0x8a   : > { %1018 = vmatpush1.bf16.msra.mxu0 %v2773_v39  ;;  %1059 = vmatpush1.bf16.msra.mxu1 %v2776_v40  ;;  %v581_v39 = vld [vmem:[#allocation3] sm:$0x3] }
  0x8b   : > { %1019 = vmatprep.subr.bf16.mxu0 %v2781_v41  ;;  %1060 = vmatprep.subr.bf16.mxu1 %v2784_v42 }
  0x8e   : > { %1020 = vmatpush1.bf16.msra.mxu0 %v2779_v43  ;;  %1061 = vmatpush1.bf16.msra.mxu1 %v2782_v44 }
  0x8f   : > { %1021 = vmatprep.subr.bf16.mxu0 %v2787_v45  ;;  %1062 = vmatprep.subr.bf16.mxu1 %v2790_v46 }
  0x92   : > { %1022 = vmatpush1.bf16.msra.mxu0 %v2785_v47  ;;  %1063 = vmatpush1.bf16.msra.mxu1 %v2788_v48 }
  0x93   : > { %1023 = vmatprep.subr.bf16.mxu0 %v2793_v49  ;;  %1064 = vmatprep.subr.bf16.mxu1 %v2796_v50  ;;  %v2364_v50 = vld [vmem:[%s3318_s3 + $0x4] sm:$0xf] }
  0x94   : > { %v676_v1 = vrot.slane %v2364_v50, %v3243_v14 }
  0x96   : > { %1024 = vmatpush1.bf16.msra.mxu0 %v2791_v51  ;;  %1065 = vmatpush1.bf16.msra.mxu1 %v2794_v52  ;;  %v664_v51 = vrot.slane %v2364_v50, %v3234_v9  ;;  %v668_v52 = vrot.slane %v2364_v50, %v3239_v11 }
  0x97   : > { %1025 = vmatprep.subr.bf16.mxu0 %v2799_v53  ;;  %1066 = vmatprep.subr.bf16.mxu1 %v2802_v54 }
  0x9a   : > { %1026 = vmatpush1.bf16.msra.mxu0 %v2797_v55  ;;  %1067 = vmatpush1.bf16.msra.mxu1 %v2800_v56 }
  0x9b   : > { %1027 = vmatprep.subr.bf16.mxu0 %v2805_v58  ;;  %1068 = vmatprep.subr.bf16.mxu1 %v2808_v60 }
  0x9e   : > { %1028 = vmatpush1.bf16.msra.mxu0 %v2803_v57  ;;  %1069 = vmatpush1.bf16.msra.mxu1 %v2806_v59 }
  0x9f   : > { %1029 = vmatprep.subr.bf16.mxu0 %v2811_v61  ;;  %1070 = vmatprep.subr.bf16.mxu1 %v2814_v62 }
  0xa2   : > { %1030 = vmatpush1.bf16.msra.mxu0 %v2809_v63  ;;  %1071 = vmatpush1.bf16.msra.mxu1 %v2812_v0 }
  0xa3   : > { %1031 = vmatprep.subr.bf16.mxu0 %v2817_v2  ;;  %1072 = vmatprep.subr.bf16.mxu1 %v2820_v3  ;;  %v672_v3 = vrot.slane %v2364_v50, %v3246_v24 }
  0xa6   : > { %1032 = vmatpush1.bf16.msra.mxu0 %v2815_v5  ;;  %1073 = vmatpush1.bf16.msra.mxu1 %v2818_v6 }
 0x13c   : > { %v514_v15 = vpop.f32.mrb[0].mxu0  ;;  %v555_v25 = vpop.f32.mrb[0].mxu1 }
 0x13d   : > { %v515_v16 = vadd.f32 %v514_v15, %v143_v12  ;;  %v516_v17 = vpop.f32.mrb[1].mxu0  ;;  %v557_v26 = vpop.f32.mrb[1].mxu1  ;;  %v556_v32 = vadd.f32 %v555_v25, %v151_v29  ;;  %v1103_v15 = vld [vmem:[#allocation3 + $0x2] sm:$0x3] }
 0x13e   : > { %v517_v18 = vadd.f32 %v516_v17, %v147_v13  ;;  %v518_v19 = vpop.f32.mrb[2].mxu0  ;;  %v558_v27 = vadd.f32 %v557_v26, %v155_v22  ;;  %v559_v28 = vpop.f32.mrb[2].mxu1  ;;  %v1111_v26 = vld [vmem:[%s3316_s1] sm:$0x3] (%p64_p2) }
 0x13f   : > { %v2361_v20 = vmul.f32 -1.442695, %v515_v16  ;;  %v519_v21 = vpop.f32.mrb[3].mxu0  ;;  %v560_v30 = vpop.f32.mrb[3].mxu1  ;;  %1112 = vst [vmem:[#allocation4] sm:$0x3] (%p64_p2), %v1111_v26 }
 0x140   : > { %v2362_v23 = vmul.f32 -1.442695, %v517_v18  ;;  %v2363_v31 = vmul.f32 -1.442695, %v558_v27 }
 0x141   : > { %2821 = vpow2.f32 %v2361_v20 }
 0x142   : > { %2823 = vpow2.f32 %v2362_v23 }
 0x143   : > { %2825 = vpow2.f32 %v2363_v31 }
 0x144   : > { %2827 = vtanh.f32 %v556_v32 }
 0x14b   : > { %v2822_v33 = vpop.eup %2821 }
 0x14c   : > { %v2824_v34 = vpop.eup %2823  ;;  %v565_v35 = vadd.f32 1.0, %v2822_v33 }
 0x14d   : > { %v571_v36 = vadd.f32 1.0, %v2824_v34  ;;  %v2826_v37 = vpop.eup %2825 }
 0x14e   : > { %2829 = vrcp.f32 %v565_v35  ;;  %v2828_v38 = vpop.eup %2827  ;;  %v578_v41 = vadd.f32 1.0, %v2826_v37 }
 0x14f   : > { %2831 = vrcp.f32 %v571_v36 }
 0x150   : > { %2833 = vrcp.f32 %v578_v41 }
 0x158   : > { %v2830_v40 = vpop.eup %2829 }
 0x159   : > { %v2832_v42 = vpop.eup %2831  ;;  %v583_v43 = vmul.f32 %v2830_v40, %v2828_v38 }
 0x15a   : > { %v582_v44 = vmul.f32 %v2832_v42, %v581_v39  ;;  %v2834_v46 = vpop.eup %2833 }
 0x15c   : > { %v584_v45 = vadd.f32 %v583_v43, %v582_v44 }
 0x15e   : > { %2835 = vtanh.f32 %v584_v45  ;;  %588 = vst [vmem:[#allocation3] sm:$0x3] %v584_v45 }
 0x168   : > { %v2836_v47 = vpop.eup %2835 }
 0x169   : > { %v586_v48 = vmul.f32 %v2836_v47, %v2834_v46 }
 0x16b   : > { %587 = vst [vmem:[#allocation2] sm:$0x3] %v586_v48  ;;  %v591_v49 = vpack.c.bf16 %v586_v48, %v586_v48 }
 0x16d   : > { %1034 = vmatmul.mubr.bf16.vlgmr.msra.gmra.mrb[4].mxu0 %v591_v49  ;;  %1075 = vmatmul.mubr.bf16.vlgmr.msra.gmra.mrb[4].mxu1 %v591_v49 }
 0x240   : > { %v1035_v53 = vpop.f32.mrb[4].mxu0  ;;  %v1076_v54 = vpop.f32.mrb[4].mxu1 }
 0x241   : > { %v1036_v55 = vadd.f32 %v1035_v53, %v664_v51  ;;  %v1037_v56 = vpop.f32.mrb[5].mxu0  ;;  %v1078_v57 = vpop.f32.mrb[5].mxu1  ;;  %v1077_v5 = vadd.f32 %v1076_v54, %v672_v3 }
 0x242   : > { %v1038_v58 = vadd.f32 %v1037_v56, %v668_v52  ;;  %v1039_v59 = vpop.f32.mrb[6].mxu0  ;;  %v1080_v60 = vpop.f32.mrb[6].mxu1  ;;  %v1079_v2 = vadd.f32 %v1078_v57, %v676_v1 }
 0x243   : > { %v2429_v61 = vmul.f32 -1.442695, %v1036_v55  ;;  %v1040_v62 = vpop.f32.mrb[7].mxu0  ;;  %v1081_v63 = vpop.f32.mrb[7].mxu1 }
 0x244   : > { %v2430_v0 = vmul.f32 -1.442695, %v1038_v58  ;;  %v2431_v4 = vmul.f32 -1.442695, %v1079_v2 }
 0x245   : > { %2837 = vpow2.f32 %v2429_v61 }
 0x246   : > { %2839 = vpow2.f32 %v2430_v0 }
 0x247   : > { %2841 = vpow2.f32 %v2431_v4 }
 0x248   : > { %2843 = vtanh.f32 %v1077_v5 }
 0x24f   : > { %v2838_v6 = vpop.eup %2837 }
 0x250   : > { %v2840_v7 = vpop.eup %2839  ;;  %v1086_v8 = vadd.f32 1.0, %v2838_v6 }
 0x251   : > { %v1092_v10 = vadd.f32 1.0, %v2840_v7  ;;  %v2842_v12 = vpop.eup %2841 }
 0x252   : > { %2845 = vrcp.f32 %v1086_v8  ;;  %v2844_v13 = vpop.eup %2843  ;;  %v1099_v19 = vadd.f32 1.0, %v2842_v12 }
 0x253   : > { %2847 = vrcp.f32 %v1092_v10 }
 0x254   : > { %2849 = vrcp.f32 %v1099_v19 }
 0x25c   : > { %v2846_v16 = vpop.eup %2845 }
 0x25d   : > { %v2848_v17 = vpop.eup %2847  ;;  %v1105_v18 = vmul.f32 %v2846_v16, %v2844_v13 }
 0x25e   : > { %v1104_v20 = vmul.f32 %v2848_v17, %v1103_v15  ;;  %v2850_v22 = vpop.eup %2849 }
 0x260   : > { %v1106_v21 = vadd.f32 %v1105_v18, %v1104_v20 }
 0x262   : > { %2851 = vtanh.f32 %v1106_v21  ;;  %1110 = vst [vmem:[#allocation3 + $0x2] sm:$0x3] %v1106_v21 }
 0x269   :  { %66 = sbr.rel (!%p64_p2) target bundleno = 40 (0x28), region = 84 }
 0x26c   : > { %v2852_v23 = vpop.eup %2851 }
 0x26d   : > { %v1108_v25 = vmul.f32 %v2852_v23, %v2850_v22 }
 0x26f   : > { %1109 = vst [vmem:[#allocation2 + $0x2] sm:$0x3] %v1108_v25 }
 0x270 LB: > { %v2853_v27 = vld [vmem:[#allocation7 + $0x4] ss:$16 sps:$4 sm:$0xff]   ;;  %v2855_v28 = vld [vmem:[#allocation7] ss:$16 sps:$4 sm:$0xff]   ;;  %v2864_v32 = vld [vmem:[#allocation7 + $0xc] ss:$16 sps:$4 sm:$0xff]   ;;  %s3147_s18 = sphi %s3262_s18, %s1118_s18  }
 0x271   : > { %1529 = vmatprep.subr.bf16.mxu0 %v2853_v27  ;;  %v2856_v29 = vld [vmem:[#allocation7 + $0x24] ss:$16 sps:$4 sm:$0xff]   ;;  %v2858_v30 = vld [vmem:[#allocation7 + $0x20] ss:$16 sps:$4 sm:$0xff]   ;;  %v2867_v33 = vld [vmem:[#allocation7 + $0x8] ss:$16 sps:$4 sm:$0xff]   ;;  %1570 = vmatprep.subr.bf16.mxu1 %v2864_v32 }
 0x272   : > { %1530 = vmatpush1.bf16.msra.mxu0 %v2855_v28  ;;  %v2859_v31 = vld [vmem:[#allocation7 + $0x44] ss:$16 sps:$4 sm:$0xff]   ;;  %v2861_v34 = vld [vmem:[#allocation7 + $0x40] ss:$16 sps:$4 sm:$0xff]   ;;  %1571 = vmatpush1.bf16.msra.mxu1 %v2867_v33  ;;  %v2870_v36 = vld [vmem:[#allocation7 + $0x2c] ss:$16 sps:$4 sm:$0xff]  }
 0x273   : > { %1531 = vmatprep.subr.bf16.mxu0 %v2856_v29  ;;  %v2862_v35 = vld [vmem:[#allocation7 + $0x64] ss:$16 sps:$4 sm:$0xff]   ;;  %v2873_v37 = vld [vmem:[#allocation7 + $0x28] ss:$16 sps:$4 sm:$0xff]   ;;  %1572 = vmatprep.subr.bf16.mxu1 %v2870_v36  ;;  %v2866_v38 = vld [vmem:[#allocation7 + $0x60] ss:$16 sps:$4 sm:$0xff]  }
 0x274   : > { %v2868_v39 = vld [vmem:[#allocation7 + $0x84] ss:$16 sps:$4 sm:$0xff]   ;;  %v2876_v40 = vld [vmem:[#allocation7 + $0x4c] ss:$16 sps:$4 sm:$0xff]   ;;  %v2879_v41 = vld [vmem:[#allocation7 + $0x48] ss:$16 sps:$4 sm:$0xff]  }
 0x275   : > { %v2882_v42 = vld [vmem:[#allocation7 + $0x6c] ss:$16 sps:$4 sm:$0xff]   ;;  %v2872_v43 = vld [vmem:[#allocation7 + $0x80] ss:$16 sps:$4 sm:$0xff]   ;;  %v2874_v44 = vld [vmem:[#allocation7 + $0xa4] ss:$16 sps:$4 sm:$0xff]  }
 0x276   : > { %1532 = vmatpush1.bf16.msra.mxu0 %v2858_v30  ;;  %1573 = vmatpush1.bf16.msra.mxu1 %v2873_v37  ;;  %v2885_v45 = vld [vmem:[#allocation7 + $0x68] ss:$16 sps:$4 sm:$0xff]   ;;  %v2888_v46 = vld [vmem:[#allocation7 + $0x8c] ss:$16 sps:$4 sm:$0xff]   ;;  %v2878_v47 = vld [vmem:[#allocation7 + $0xa0] ss:$16 sps:$4 sm:$0xff]  }
 0x277   : > { %1533 = vmatprep.subr.bf16.mxu0 %v2859_v31  ;;  %1574 = vmatprep.subr.bf16.mxu1 %v2876_v40  ;;  %v2880_v48 = vld [vmem:[#allocation7 + $0xc4] ss:$16 sps:$4 sm:$0xff]   ;;  %v2891_v49 = vld [vmem:[#allocation7 + $0x88] ss:$16 sps:$4 sm:$0xff]   ;;  %v2894_v50 = vld [vmem:[#allocation7 + $0xac] ss:$16 sps:$4 sm:$0xff]  }
 0x278   : > { %v2884_v51 = vld [vmem:[#allocation7 + $0xc0] ss:$16 sps:$4 sm:$0xff]   ;;  %v2886_v52 = vld [vmem:[#allocation7 + $0xe4] ss:$16 sps:$4 sm:$0xff]   ;;  %v2897_v53 = vld [vmem:[#allocation7 + $0xa8] ss:$16 sps:$4 sm:$0xff]  }
 0x279   : > { %v2900_v54 = vld [vmem:[#allocation7 + $0xcc] ss:$16 sps:$4 sm:$0xff]   ;;  %v2890_v55 = vld [vmem:[#allocation7 + $0xe0] ss:$16 sps:$4 sm:$0xff]   ;;  %v2892_v56 = vld [vmem:[#allocation7 + $0x104] ss:$16 sps:$4 sm:$0xff]  }
 0x27a   : > { %1534 = vmatpush1.bf16.msra.mxu0 %v2861_v34  ;;  %1575 = vmatpush1.bf16.msra.mxu1 %v2879_v41  ;;  %v2903_v57 = vld [vmem:[#allocation7 + $0xc8] ss:$16 sps:$4 sm:$0xff]   ;;  %v2906_v58 = vld [vmem:[#allocation7 + $0xec] ss:$16 sps:$4 sm:$0xff]   ;;  %v2896_v59 = vld [vmem:[#allocation7 + $0x100] ss:$16 sps:$4 sm:$0xff]  }
 0x27b   : > { %1535 = vmatprep.subr.bf16.mxu0 %v2862_v35  ;;  %1576 = vmatprep.subr.bf16.mxu1 %v2882_v42  ;;  %v2898_v60 = vld [vmem:[#allocation7 + $0x124] ss:$16 sps:$4 sm:$0xff]   ;;  %v2909_v61 = vld [vmem:[#allocation7 + $0xe8] ss:$16 sps:$4 sm:$0xff]   ;;  %v2912_v62 = vld [vmem:[#allocation7 + $0x10c] ss:$16 sps:$4 sm:$0xff]  }
 0x27c   : > { %v2902_v63 = vld [vmem:[#allocation7 + $0x120] ss:$16 sps:$4 sm:$0xff]   ;;  %v2904_v0 = vld [vmem:[#allocation7 + $0x144] ss:$16 sps:$4 sm:$0xff]   ;;  %v2915_v1 = vld [vmem:[#allocation7 + $0x108] ss:$16 sps:$4 sm:$0xff]  }
 0x27d   : > { %v2918_v2 = vld [vmem:[#allocation7 + $0x12c] ss:$16 sps:$4 sm:$0xff]   ;;  %v1120_v3 = vld [vmem:[#allocation2] sm:$0x3]  ;;  %v2908_v4 = vld [vmem:[#allocation7 + $0x140] ss:$16 sps:$4 sm:$0xff]  }
 0x27e   : > { %1536 = vmatpush1.bf16.msra.mxu0 %v2866_v38  ;;  %1577 = vmatpush1.bf16.msra.mxu1 %v2885_v45  ;;  %v1122_v5 = vpack.c.bf16 %v1120_v3, %v1120_v3  ;;  %v2910_v6 = vld [vmem:[#allocation7 + $0x164] ss:$16 sps:$4 sm:$0xff]   ;;  %v2921_v7 = vld [vmem:[#allocation7 + $0x128] ss:$16 sps:$4 sm:$0xff]   ;;  %v2924_v8 = vld [vmem:[#allocation7 + $0x14c] ss:$16 sps:$4 sm:$0xff]  }
 0x27f   : > { %1537 = vmatprep.subr.bf16.mxu0 %v2868_v39  ;;  %1578 = vmatprep.subr.bf16.mxu1 %v2888_v46  ;;  %v2914_v10 = vld [vmem:[#allocation7 + $0x160] ss:$16 sps:$4 sm:$0xff]   ;;  %v2916_v12 = vld [vmem:[#allocation7 + $0x184] ss:$16 sps:$4 sm:$0xff]   ;;  %v2927_v13 = vld [vmem:[#allocation7 + $0x148] ss:$16 sps:$4 sm:$0xff]  }
 0x280   : > { %1561 = vmatprep.mubr.bf16.mxu0 %v1122_v5  ;;  %1602 = vmatprep.mubr.bf16.mxu1 %v1122_v5  ;;  %v2930_v15 = vld [vmem:[#allocation7 + $0x16c] ss:$16 sps:$4 sm:$0xff]   ;;  %v2920_v16 = vld [vmem:[#allocation7 + $0x180] ss:$16 sps:$4 sm:$0xff]   ;;  %v2922_v17 = vld [vmem:[#allocation7 + $0x1a4] ss:$16 sps:$4 sm:$0xff]  }
 0x281   : > { %v2933_v18 = vld [vmem:[#allocation7 + $0x168] ss:$16 sps:$4 sm:$0xff]   ;;  %v2936_v19 = vld [vmem:[#allocation7 + $0x18c] ss:$16 sps:$4 sm:$0xff]   ;;  %v2926_v20 = vld [vmem:[#allocation7 + $0x1a0] ss:$16 sps:$4 sm:$0xff]  }
 0x282   : > { %1538 = vmatpush1.bf16.msra.mxu0 %v2872_v43  ;;  %1579 = vmatpush1.bf16.msra.mxu1 %v2891_v49  ;;  %v2928_v21 = vld [vmem:[#allocation7 + $0x1c4] ss:$16 sps:$4 sm:$0xff]   ;;  %v2939_v22 = vld [vmem:[#allocation7 + $0x188] ss:$16 sps:$4 sm:$0xff]   ;;  %v2932_v23 = vld [vmem:[#allocation7 + $0x1c0] ss:$16 sps:$4 sm:$0xff]  }
 0x283   : > { %1539 = vmatprep.subr.bf16.mxu0 %v2874_v44  ;;  %1580 = vmatprep.subr.bf16.mxu1 %v2894_v50  ;;  %v2940_v25 = vld [vmem:[#allocation7 + $0x1ac] ss:$16 sps:$4 sm:$0xff]   ;;  %v2934_v26 = vld [vmem:[#allocation7 + $0x1e4] ss:$16 sps:$4 sm:$0xff]   ;;  %v2942_v27 = vld [vmem:[#allocation7 + $0x1a8] ss:$16 sps:$4 sm:$0xff]  }
 0x284   : > { %v2943_v28 = vld [vmem:[#allocation7 + $0x1cc] ss:$16 sps:$4 sm:$0xff]   ;;  %v2938_v29 = vld [vmem:[#allocation7 + $0x1e0] ss:$16 sps:$4 sm:$0xff]   ;;  %v2945_v31 = vld [vmem:[#allocation7 + $0x1c8] ss:$16 sps:$4 sm:$0xff]  }
 0x285   : > { %v1119_v30 = vld [vmem:[#allocation4] sm:$0x3]  ;;  %v2951_v32 = vld [vmem:[#allocation7 + $0x204] ss:$16 sps:$4 sm:$0xff]   ;;  %v2949_v34 = vld [vmem:[#allocation7 + $0x200] ss:$16 sps:$4 sm:$0xff]  }
 0x286   : > { %1540 = vmatpush1.bf16.msra.mxu0 %v2878_v47  ;;  %1581 = vmatpush1.bf16.msra.mxu1 %v2897_v53  ;;  %v2946_v33 = vld [vmem:[#allocation7 + $0x1ec] ss:$16 sps:$4 sm:$0xff]   ;;  %v1121_v35 = vpack.c.bf16 %v1119_v30, %v1119_v30  ;;  %v2948_v36 = vld [vmem:[#allocation7 + $0x1e8] ss:$16 sps:$4 sm:$0xff]   ;;  %v2957_v37 = vld [vmem:[#allocation7 + $0x224] ss:$16 sps:$4 sm:$0xff]  }
 0x287   : > { %1541 = vmatprep.subr.bf16.mxu0 %v2880_v48  ;;  %1582 = vmatprep.subr.bf16.mxu1 %v2900_v54  ;;  %v2954_v38 = vld [vmem:[#allocation7 + $0x20c] ss:$16 sps:$4 sm:$0xff]   ;;  %v2955_v39 = vld [vmem:[#allocation7 + $0x220] ss:$16 sps:$4 sm:$0xff]   ;;  %v2952_v40 = vld [vmem:[#allocation7 + $0x208] ss:$16 sps:$4 sm:$0xff]  }
 0x288   : > { %v2963_v41 = vld [vmem:[#allocation7 + $0x244] ss:$16 sps:$4 sm:$0xff]   ;;  %v2960_v42 = vld [vmem:[#allocation7 + $0x22c] ss:$16 sps:$4 sm:$0xff]   ;;  %v2961_v43 = vld [vmem:[#allocation7 + $0x240] ss:$16 sps:$4 sm:$0xff]  }
 0x289   : > { %v2958_v44 = vld [vmem:[#allocation7 + $0x228] ss:$16 sps:$4 sm:$0xff]   ;;  %v2969_v45 = vld [vmem:[#allocation7 + $0x264] ss:$16 sps:$4 sm:$0xff]   ;;  %v2966_v46 = vld [vmem:[#allocation7 + $0x24c] ss:$16 sps:$4 sm:$0xff]  }
 0x28a   : > { %1542 = vmatpush1.bf16.msra.mxu0 %v2884_v51  ;;  %1583 = vmatpush1.bf16.msra.mxu1 %v2903_v57  ;;  %v2967_v47 = vld [vmem:[#allocation7 + $0x260] ss:$16 sps:$4 sm:$0xff]   ;;  %v2964_v48 = vld [vmem:[#allocation7 + $0x248] ss:$16 sps:$4 sm:$0xff]   ;;  %v2972_v49 = vld [vmem:[#allocation7 + $0x26c] ss:$16 sps:$4 sm:$0xff]  }
 0x28b   : > { %1543 = vmatprep.subr.bf16.mxu0 %v2886_v52  ;;  %1584 = vmatprep.subr.bf16.mxu1 %v2906_v58  ;;  %v2970_v50 = vld [vmem:[#allocation7 + $0x268] ss:$16 sps:$4 sm:$0xff]   ;;  %v2975_v51 = vld [vmem:[#allocation7 + $0x284] ss:$16 sps:$4 sm:$0xff]   ;;  %v2978_v52 = vld [vmem:[#allocation7 + $0x28c] ss:$16 sps:$4 sm:$0xff]  }
 0x28c   : > { %v2973_v53 = vld [vmem:[#allocation7 + $0x280] ss:$16 sps:$4 sm:$0xff]   ;;  %v2976_v54 = vld [vmem:[#allocation7 + $0x288] ss:$16 sps:$4 sm:$0xff]   ;;  %v2999_v3 = vld [vmem:[#allocation7 + $0x304] ss:$16 sps:$4 sm:$0xff]  }
 0x28d   : > { %v2979_v57 = vld [vmem:[#allocation7 + $0x2a0] ss:$16 sps:$4 sm:$0xff]   ;;  %v2982_v58 = vld [vmem:[#allocation7 + $0x2a8] ss:$16 sps:$4 sm:$0xff]   ;;  %v3032_v30 = vld [vmem:[#allocation7 + $0x3ac] ss:$16 sps:$4 sm:$0xff]  }
 0x28e   : > { %1544 = vmatpush1.bf16.msra.mxu0 %v2890_v55  ;;  %1585 = vmatpush1.bf16.msra.mxu1 %v2909_v61  ;;  %v2981_v55 = vld [vmem:[#allocation7 + $0x2a4] ss:$16 sps:$4 sm:$0xff]   ;;  %v2985_v61 = vld [vmem:[#allocation7 + $0x2c0] ss:$16 sps:$4 sm:$0xff]   ;;  %vm3155_vm0 = vmmov 0   ;;  %s2576_s12 = sshll.u32 %s3147_s18, 1 }
 0x28f   : > { %1545 = vmatprep.subr.bf16.mxu0 %v2892_v56  ;;  %1586 = vmatprep.subr.bf16.mxu1 %v2912_v62  ;;  %v2984_v56 = vld [vmem:[#allocation7 + $0x2ac] ss:$16 sps:$4 sm:$0xff]   ;;  %v2988_v62 = vld [vmem:[#allocation7 + $0x2c8] ss:$16 sps:$4 sm:$0xff]   ;;  %v2997_v5 = vld [vmem:[#allocation7 + $0x300] ss:$16 sps:$4 sm:$0xff]   ;;  %s2273_s17 = scalar_lea.vmem %s3323_s8, %s2576_s12 }
 0x290   : > { %s1118_s18 = sadd.s32 1, %s3147_s18  }
 0x291   : > { %p1115_p3 = scmp.ge.s32.totalorder %s1118_s18, 4  }
 0x292   : > { %1546 = vmatpush1.bf16.msra.mxu0 %v2896_v59  ;;  %1587 = vmatpush1.bf16.msra.mxu1 %v2915_v1  ;;  %v2987_v59 = vld [vmem:[#allocation7 + $0x2c4] ss:$16 sps:$4 sm:$0xff]   ;;  %v2991_v1 = vld [vmem:[#allocation7 + $0x2e0] ss:$16 sps:$4 sm:$0xff]  }
 0x293   : > { %1547 = vmatprep.subr.bf16.mxu0 %v2898_v60  ;;  %1588 = vmatprep.subr.bf16.mxu1 %v2918_v2  ;;  %v2990_v60 = vld [vmem:[#allocation7 + $0x2cc] ss:$16 sps:$4 sm:$0xff]   ;;  %v2994_v2 = vld [vmem:[#allocation7 + $0x2e8] ss:$16 sps:$4 sm:$0xff]  }
 0x296   : > { %1548 = vmatpush1.bf16.msra.mxu0 %v2902_v63  ;;  %1589 = vmatpush1.bf16.msra.mxu1 %v2921_v7  ;;  %v2993_v63 = vld [vmem:[#allocation7 + $0x2e4] ss:$16 sps:$4 sm:$0xff]  }
 0x297   : > { %1549 = vmatprep.subr.bf16.mxu0 %v2904_v0  ;;  %1590 = vmatprep.subr.bf16.mxu1 %v2924_v8  ;;  %v2996_v0 = vld [vmem:[#allocation7 + $0x2ec] ss:$16 sps:$4 sm:$0xff]   ;;  %v3005_v7 = vld [vmem:[#allocation7 + $0x324] ss:$16 sps:$4 sm:$0xff]  }
 0x298   : > { %v3008_v8 = vld [vmem:[#allocation7 + $0x32c] ss:$16 sps:$4 sm:$0xff]  }
 0x29a   : > { %1550 = vmatpush1.bf16.msra.mxu0 %v2908_v4  ;;  %1591 = vmatpush1.bf16.msra.mxu1 %v2927_v13  ;;  %v3002_v4 = vld [vmem:[#allocation7 + $0x30c] ss:$16 sps:$4 sm:$0xff]   ;;  %v3011_v13 = vld [vmem:[#allocation7 + $0x344] ss:$16 sps:$4 sm:$0xff]  }
 0x29b   : > { %1551 = vmatprep.subr.bf16.mxu0 %v2910_v6  ;;  %1592 = vmatprep.subr.bf16.mxu1 %v2930_v15  ;;  %v3000_v6 = vld [vmem:[#allocation7 + $0x308] ss:$16 sps:$4 sm:$0xff]   ;;  %v3014_v15 = vld [vmem:[#allocation7 + $0x34c] ss:$16 sps:$4 sm:$0xff]  }
 0x29e   : > { %1552 = vmatpush1.bf16.msra.mxu0 %v2914_v10  ;;  %1593 = vmatpush1.bf16.msra.mxu1 %v2933_v18  ;;  %v3003_v10 = vld [vmem:[#allocation7 + $0x320] ss:$16 sps:$4 sm:$0xff]   ;;  %v3017_v18 = vld [vmem:[#allocation7 + $0x364] ss:$16 sps:$4 sm:$0xff]  }
 0x29f   : > { %1553 = vmatprep.subr.bf16.mxu0 %v2916_v12  ;;  %1594 = vmatprep.subr.bf16.mxu1 %v2936_v19  ;;  %v3006_v12 = vld [vmem:[#allocation7 + $0x328] ss:$16 sps:$4 sm:$0xff]   ;;  %v3020_v19 = vld [vmem:[#allocation7 + $0x36c] ss:$16 sps:$4 sm:$0xff]  }
 0x2a2   : > { %1554 = vmatpush1.bf16.msra.mxu0 %v2920_v16  ;;  %1595 = vmatpush1.bf16.msra.mxu1 %v2939_v22  ;;  %v3009_v16 = vld [vmem:[#allocation7 + $0x340] ss:$16 sps:$4 sm:$0xff]   ;;  %v3023_v22 = vld [vmem:[#allocation7 + $0x384] ss:$16 sps:$4 sm:$0xff]  }
 0x2a3   : > { %1555 = vmatprep.subr.bf16.mxu0 %v2922_v17  ;;  %1596 = vmatprep.subr.bf16.mxu1 %v2940_v25  ;;  %v3012_v17 = vld [vmem:[#allocation7 + $0x348] ss:$16 sps:$4 sm:$0xff]   ;;  %v3021_v25 = vld [vmem:[#allocation7 + $0x380] ss:$16 sps:$4 sm:$0xff]  }
 0x2a6   : > { %1556 = vmatpush1.bf16.msra.mxu0 %v2926_v20  ;;  %1597 = vmatpush1.bf16.msra.mxu1 %v2942_v27  ;;  %v3015_v20 = vld [vmem:[#allocation7 + $0x360] ss:$16 sps:$4 sm:$0xff]  }
 0x2a7   : > { %1557 = vmatprep.subr.bf16.mxu0 %v2928_v21  ;;  %1598 = vmatprep.subr.bf16.mxu1 %v2943_v28  ;;  %v3018_v21 = vld [vmem:[#allocation7 + $0x368] ss:$16 sps:$4 sm:$0xff]   ;;  %v3027_v27 = vld [vmem:[#allocation7 + $0x3a0] ss:$16 sps:$4 sm:$0xff]   ;;  %v3029_v28 = vld [vmem:[#allocation7 + $0x3a4] ss:$16 sps:$4 sm:$0xff]  }
 0x2aa   : > { %1558 = vmatpush1.bf16.msra.mxu0 %v2932_v23  ;;  %1599 = vmatpush1.bf16.msra.mxu1 %v2945_v31  ;;  %v3026_v23 = vld [vmem:[#allocation7 + $0x38c] ss:$16 sps:$4 sm:$0xff]   ;;  %v3035_v31 = vld [vmem:[#allocation7 + $0x3c4] ss:$16 sps:$4 sm:$0xff]  }
 0x2ab   : > { %1559 = vmatprep.subr.bf16.mxu0 %v2934_v26  ;;  %1600 = vmatprep.subr.bf16.mxu1 %v2946_v33  ;;  %v3024_v26 = vld [vmem:[#allocation7 + $0x388] ss:$16 sps:$4 sm:$0xff]   ;;  %v3033_v33 = vld [vmem:[#allocation7 + $0x3c0] ss:$16 sps:$4 sm:$0xff]  }
 0x2ae   : > { %1560 = vmatpush1.bf16.msra.mxu0 %v2938_v29  ;;  %1601 = vmatpush1.bf16.msra.mxu1 %v2948_v36  ;;  %v3030_v29 = vld [vmem:[#allocation7 + $0x3a8] ss:$16 sps:$4 sm:$0xff]   ;;  %v3041_v36 = vld [vmem:[#allocation7 + $0x3e4] ss:$16 sps:$4 sm:$0xff]  }
 0x2af   : > { %2050 = vmatprep.subr.bf16.mxu0 %v2951_v32  ;;  %2091 = vmatprep.subr.bf16.mxu1 %v2954_v38  ;;  %v3038_v32 = vld [vmem:[#allocation7 + $0x3cc] ss:$16 sps:$4 sm:$0xff]  }
 0x2b1   : > { %1562 = vmatmul.mubr.bf16.vlgmr.msra.gmra.mrb[0].mxu0 %v1121_v35  ;;  %1603 = vmatmul.mubr.bf16.vlgmr.msra.gmra.mrb[0].mxu1 %v1121_v35  ;;  %v1639_v35 = vld [vmem:[#allocation2 + $0x2] sm:$0x3] }
 0x2b2   : > { %2051 = vmatpush1.bf16.msra.mxu0 %v2949_v34  ;;  %2092 = vmatpush1.bf16.msra.mxu1 %v2952_v40  ;;  %v3036_v34 = vld [vmem:[#allocation7 + $0x3c8] ss:$16 sps:$4 sm:$0xff]   ;;  %v1641_v38 = vpack.c.bf16 %v1639_v35, %v1639_v35 }
 0x2b3   : > { %2052 = vmatprep.subr.bf16.mxu0 %v2957_v37  ;;  %2093 = vmatprep.subr.bf16.mxu1 %v2960_v42  ;;  %v3044_v37 = vld [vmem:[#allocation7 + $0x3ec] ss:$16 sps:$4 sm:$0xff]   ;;  %v3042_v40 = vld [vmem:[#allocation7 + $0x3e8] ss:$16 sps:$4 sm:$0xff]  }
 0x2b4   : > { %2082 = vmatprep.mubr.bf16.mxu0 %v1641_v38  ;;  %2123 = vmatprep.mubr.bf16.mxu1 %v1641_v38 }
 0x2b6   : > { %2053 = vmatpush1.bf16.msra.mxu0 %v2955_v39  ;;  %2094 = vmatpush1.bf16.msra.mxu1 %v2958_v44  ;;  %v3039_v39 = vld [vmem:[#allocation7 + $0x3e0] ss:$16 sps:$4 sm:$0xff]  }
 0x2b7   : > { %2054 = vmatprep.subr.bf16.mxu0 %v2963_v41  ;;  %2095 = vmatprep.subr.bf16.mxu1 %v2966_v46  ;;  %v1187_v41 = vld [vmem:[%s3320_s5] sm:$0xf] }
 0x2b8   : > { %v1192_v42 = vrot.slane %v1187_v41, %v3234_v9 }
 0x2ba   : > { %2055 = vmatpush1.bf16.msra.mxu0 %v2961_v43  ;;  %2096 = vmatpush1.bf16.msra.mxu1 %v2964_v48  ;;  %v1196_v43 = vrot.slane %v1187_v41, %v3239_v11 }
 0x2bb   : > { %2056 = vmatprep.subr.bf16.mxu0 %v2969_v45  ;;  %2097 = vmatprep.subr.bf16.mxu1 %v2972_v49 }
 0x2be   : > { %2057 = vmatpush1.bf16.msra.mxu0 %v2967_v47  ;;  %2098 = vmatpush1.bf16.msra.mxu1 %v2970_v50 }
 0x2bf   : > { %2058 = vmatprep.subr.bf16.mxu0 %v2975_v51  ;;  %2099 = vmatprep.subr.bf16.mxu1 %v2978_v52  ;;  %v1204_v51 = vrot.slane %v1187_v41, %v3243_v14 }
 0x2c2   : > { %2059 = vmatpush1.bf16.msra.mxu0 %v2973_v53  ;;  %2100 = vmatpush1.bf16.msra.mxu1 %v2976_v54 }
 0x2c3   : > { %2060 = vmatprep.subr.bf16.mxu0 %v2981_v55  ;;  %2101 = vmatprep.subr.bf16.mxu1 %v2984_v56 }
 0x2c6   : > { %2061 = vmatpush1.bf16.msra.mxu0 %v2979_v57  ;;  %2102 = vmatpush1.bf16.msra.mxu1 %v2982_v58  ;;  %v1200_v57 = vrot.slane %v1187_v41, %v3246_v24 }
 0x2c7   : > { %2062 = vmatprep.subr.bf16.mxu0 %v2987_v59  ;;  %2103 = vmatprep.subr.bf16.mxu1 %v2990_v60 }
 0x2ca   : > { %2063 = vmatpush1.bf16.msra.mxu0 %v2985_v61  ;;  %2104 = vmatpush1.bf16.msra.mxu1 %v2988_v62 }
 0x2cb   : > { %2064 = vmatprep.subr.bf16.mxu0 %v2993_v63  ;;  %2105 = vmatprep.subr.bf16.mxu1 %v2996_v0 }
 0x2ce   : > { %2065 = vmatpush1.bf16.msra.mxu0 %v2991_v1  ;;  %2106 = vmatpush1.bf16.msra.mxu1 %v2994_v2 }
 0x2cf   : > { %2066 = vmatprep.subr.bf16.mxu0 %v2999_v3  ;;  %2107 = vmatprep.subr.bf16.mxu1 %v3002_v4  ;;  %v1630_v3 = vld [vmem:[#allocation3] sm:$0x3] }
 0x2d2   : > { %2067 = vmatpush1.bf16.msra.mxu0 %v2997_v5  ;;  %2108 = vmatpush1.bf16.msra.mxu1 %v3000_v6 }
 0x2d3   : > { %2068 = vmatprep.subr.bf16.mxu0 %v3005_v7  ;;  %2109 = vmatprep.subr.bf16.mxu1 %v3008_v8 }
 0x2d6   : > { %2069 = vmatpush1.bf16.msra.mxu0 %v3003_v10  ;;  %2110 = vmatpush1.bf16.msra.mxu1 %v3006_v12 }
 0x2d7   : > { %2070 = vmatprep.subr.bf16.mxu0 %v3011_v13  ;;  %2111 = vmatprep.subr.bf16.mxu1 %v3014_v15 }
 0x2da   : > { %2071 = vmatpush1.bf16.msra.mxu0 %v3009_v16  ;;  %2112 = vmatpush1.bf16.msra.mxu1 %v3012_v17  ;;  %v3045_v17 = vld [vmem:[%s3321_s6] sm:$0xff]  }
 0x2db   : > { %2072 = vmatprep.subr.bf16.mxu0 %v3017_v18  ;;  %2113 = vmatprep.subr.bf16.mxu1 %v3020_v19  ;;  %v3154_v18 = vmov 0.0   ;;  %v3046_v19 = vld [vmem:[%s3321_s6 + $0x8] sm:$0xff]  }
 0x2de   : > { %2073 = vmatpush1.bf16.msra.mxu0 %v3015_v20  ;;  %2114 = vmatpush1.bf16.msra.mxu1 %v3018_v21  ;;  %v3047_v20 = vld [vmem:[%s3321_s6 + $0x10] sm:$0xff]   ;;  %v3048_v21 = vld [vmem:[%s3321_s6 + $0x18] sm:$0xff]  }
 0x2df   : > { %2074 = vmatprep.subr.bf16.mxu0 %v3023_v22  ;;  %2115 = vmatprep.subr.bf16.mxu1 %v3026_v23  ;;  %v3049_v22 = vld [vmem:[%s3321_s6 + $0x20] sm:$0xff]   ;;  %v3050_v23 = vld [vmem:[%s3321_s6 + $0x28] sm:$0xff]  }
 0x2e2   : > { %2075 = vmatpush1.bf16.msra.mxu0 %v3021_v25  ;;  %2116 = vmatpush1.bf16.msra.mxu1 %v3024_v26  ;;  %v3051_v25 = vld [vmem:[%s3321_s6 + $0x30] sm:$0xff]   ;;  %v3052_v26 = vld [vmem:[%s3321_s6 + $0x38] sm:$0xff]  }
 0x2e3   : > { %2076 = vmatprep.subr.bf16.mxu0 %v3029_v28  ;;  %2117 = vmatprep.subr.bf16.mxu1 %v3032_v30 }
 0x2e6   : > { %2077 = vmatpush1.bf16.msra.mxu0 %v3027_v27  ;;  %2118 = vmatpush1.bf16.msra.mxu1 %v3030_v29  ;;  %v2499_v27 = vld [vmem:[%s3320_s5 + $0x4] sm:$0xf] }
 0x2e7   : > { %2078 = vmatprep.subr.bf16.mxu0 %v3035_v31  ;;  %2119 = vmatprep.subr.bf16.mxu1 %v3038_v32  ;;  %v1713_v28 = vrot.slane %v2499_v27, %v3234_v9  ;;  %v1717_v29 = vrot.slane %v2499_v27, %v3239_v11 }
 0x2ea   : > { %2079 = vmatpush1.bf16.msra.mxu0 %v3033_v33  ;;  %2120 = vmatpush1.bf16.msra.mxu1 %v3036_v34 }
 0x2eb   : > { %2080 = vmatprep.subr.bf16.mxu0 %v3041_v36  ;;  %2121 = vmatprep.subr.bf16.mxu1 %v3044_v37 }
 0x2ee   : > { %2081 = vmatpush1.bf16.msra.mxu0 %v3039_v39  ;;  %2122 = vmatpush1.bf16.msra.mxu1 %v3042_v40 }
 0x2ef   : > { %2586 = vmatprep.subr.bf16.mxu0 %v3154_v18 }
 0x384   : > { %v1563_v44 = vpop.f32.mrb[0].mxu0  ;;  %v1604_v53 = vpop.f32.mrb[0].mxu1 }
 0x385   : > { %v1564_v45 = vadd.f32 %v1563_v44, %v1192_v42  ;;  %v1565_v46 = vpop.f32.mrb[1].mxu0  ;;  %v1606_v54 = vpop.f32.mrb[1].mxu1  ;;  %v1605_v60 = vadd.f32 %v1604_v53, %v1200_v57  ;;  %v1725_v42 = vrot.slane %v2499_v27, %v3243_v14  ;;  %v1721_v44 = vrot.slane %v2499_v27, %v3246_v24  ;;  %v2152_v53 = vld [vmem:[#allocation3 + $0x2] sm:$0x3] }
 0x386   : > { %v1566_v47 = vadd.f32 %v1565_v46, %v1196_v43  ;;  %v1567_v48 = vpop.f32.mrb[2].mxu0  ;;  %v1607_v55 = vadd.f32 %v1606_v54, %v1204_v51  ;;  %v1608_v56 = vpop.f32.mrb[2].mxu1 }
 0x387   : > { %v2496_v49 = vmul.f32 -1.442695, %v1564_v45  ;;  %v1568_v50 = vpop.f32.mrb[3].mxu0  ;;  %v1609_v58 = vpop.f32.mrb[3].mxu1 }
 0x388   : > { %v2497_v52 = vmul.f32 -1.442695, %v1566_v47  ;;  %v2498_v59 = vmul.f32 -1.442695, %v1607_v55 }
 0x389   : > { %3053 = vpow2.f32 %v2496_v49 }
 0x38a   : > { %3055 = vpow2.f32 %v2497_v52 }
 0x38b   : > { %3057 = vpow2.f32 %v2498_v59 }
 0x38c   : > { %3059 = vtanh.f32 %v1605_v60 }
 0x393   : > { %v3054_v61 = vpop.eup %3053 }
 0x394   : > { %v3056_v62 = vpop.eup %3055  ;;  %v1614_v63 = vadd.f32 1.0, %v3054_v61 }
 0x395   : > { %v1620_v0 = vadd.f32 1.0, %v3056_v62  ;;  %v3058_v1 = vpop.eup %3057 }
 0x396   : > { %3061 = vrcp.f32 %v1614_v63  ;;  %v3060_v2 = vpop.eup %3059  ;;  %v1627_v5 = vadd.f32 1.0, %v3058_v1 }
 0x397   : > { %3063 = vrcp.f32 %v1620_v0  ;;  %v2567_v0 = vld [vmem:[%s3322_s7] ss:$0 sm:$0xff] }
 0x398   : > { %3065 = vrcp.f32 %v1627_v5 }
 0x3a0   : > { %v3062_v4 = vpop.eup %3061 }
 0x3a1   : > { %v3064_v6 = vpop.eup %3063  ;;  %v1632_v7 = vmul.f32 %v3062_v4, %v3060_v2 }
 0x3a2   : > { %v1631_v8 = vmul.f32 %v3064_v6, %v1630_v3  ;;  %v3066_v12 = vpop.eup %3065 }
 0x3a4   : > { %v1633_v10 = vadd.f32 %v1632_v7, %v1631_v8 }
 0x3a6   : > { %3067 = vtanh.f32 %v1633_v10  ;;  %1637 = vst [vmem:[#allocation3] sm:$0x3] %v1633_v10 }
 0x3b0   : > { %v3068_v13 = vpop.eup %3067 }
 0x3b1   : > { %v1635_v15 = vmul.f32 %v3068_v13, %v3066_v12 }
 0x3b3   : > { %1636 = vst [vmem:[#allocation2] sm:$0x3] %v1635_v15  ;;  %v1640_v16 = vpack.c.bf16 %v1635_v15, %v1635_v15 }
 0x3b5   : > { %2083 = vmatmul.mubr.bf16.vlgmr.msra.gmra.mrb[4].mxu0 %v1640_v16  ;;  %2124 = vmatmul.mubr.bf16.vlgmr.msra.gmra.mrb[4].mxu1 %v1640_v16 }
 0x3b6   : > { %2587 = vmatpush3.bf16.msra.mxu0 %v3045_v17  ;;  %2602 = vmatprep.mubr.msk.bf16.mxu0 %vm3155_vm0, %v3154_v18 }
 0x3b7   : > { %2588 = vmatprep.subr.bf16.mxu0 %v3154_v18 }
 0x3ba   : > { %2589 = vmatpush3.bf16.msra.mxu0 %v3046_v19 }
 0x3bb   : > { %2590 = vmatprep.subr.bf16.mxu0 %v3154_v18 }
 0x3be   : > { %2591 = vmatpush3.bf16.msra.mxu0 %v3047_v20 }
 0x3bf   : > { %2592 = vmatprep.subr.bf16.mxu0 %v3154_v18 }
 0x3c2   : > { %2593 = vmatpush3.bf16.msra.mxu0 %v3048_v21 }
 0x3c3   : > { %2594 = vmatprep.subr.bf16.mxu0 %v3154_v18 }
 0x3c6   : > { %2595 = vmatpush3.bf16.msra.mxu0 %v3049_v22 }
 0x3c7   : > { %2596 = vmatprep.subr.bf16.mxu0 %v3154_v18 }
 0x3ca   : > { %2597 = vmatpush3.bf16.msra.mxu0 %v3050_v23 }
 0x3cb   : > { %2598 = vmatprep.subr.bf16.mxu0 %v3154_v18 }
 0x3ce   : > { %2599 = vmatpush3.bf16.msra.mxu0 %v3051_v25 }
 0x3cf   : > { %2600 = vmatprep.subr.bf16.mxu0 %v3154_v18 }
 0x3d2   : > { %2601 = vmatpush3.bf16.msra.mxu0 %v3052_v26 }
 0x488   : > { %v2084_v30 = vpop.f32.mrb[4].mxu0  ;;  %v2125_v31 = vpop.f32.mrb[4].mxu1 }
 0x489   : > { %v2085_v32 = vadd.f32 %v2084_v30, %v1713_v28  ;;  %v2086_v33 = vpop.f32.mrb[5].mxu0  ;;  %v2127_v34 = vpop.f32.mrb[5].mxu1  ;;  %v2126_v46 = vadd.f32 %v2125_v31, %v1721_v44 }
 0x48a   : > { %v2087_v35 = vadd.f32 %v2086_v33, %v1717_v29  ;;  %v2088_v36 = vpop.f32.mrb[6].mxu0  ;;  %v2129_v37 = vpop.f32.mrb[6].mxu1  ;;  %v2128_v43 = vadd.f32 %v2127_v34, %v1725_v42 }
 0x48b   : > { %v2564_v38 = vmul.f32 -1.442695, %v2085_v32  ;;  %v2089_v39 = vpop.f32.mrb[7].mxu0  ;;  %v2130_v40 = vpop.f32.mrb[7].mxu1 }
 0x48c   : > { %v2565_v41 = vmul.f32 -1.442695, %v2087_v35  ;;  %v2566_v45 = vmul.f32 -1.442695, %v2128_v43 }
 0x48d   : > { %3069 = vpow2.f32 %v2564_v38 }
 0x48e   : > { %3071 = vpow2.f32 %v2565_v41 }
 0x48f   : > { %3073 = vpow2.f32 %v2566_v45 }
 0x490   : > { %3075 = vtanh.f32 %v2126_v46 }
 0x497   : > { %v3070_v47 = vpop.eup %3069 }
 0x498   : > { %v3072_v48 = vpop.eup %3071  ;;  %v2135_v49 = vadd.f32 1.0, %v3070_v47 }
 0x499   : > { %v2141_v50 = vadd.f32 1.0, %v3072_v48  ;;  %v3074_v51 = vpop.eup %3073 }
 0x49a   : > { %3077 = vrcp.f32 %v2135_v49  ;;  %v3076_v52 = vpop.eup %3075  ;;  %v2148_v57 = vadd.f32 1.0, %v3074_v51 }
 0x49b   : > { %3079 = vrcp.f32 %v2141_v50 }
 0x49c   : > { %3081 = vrcp.f32 %v2148_v57 }
 0x4a4   : > { %v3078_v54 = vpop.eup %3077 }
 0x4a5   : > { %v3080_v55 = vpop.eup %3079  ;;  %v2154_v56 = vmul.f32 %v3078_v54, %v3076_v52 }
 0x4a6   : > { %v2153_v58 = vmul.f32 %v3080_v55, %v2152_v53  ;;  %v3082_v60 = vpop.eup %3081 }
 0x4a8   : > { %v2155_v59 = vadd.f32 %v2154_v56, %v2153_v58 }
 0x4aa   : > { %3083 = vtanh.f32 %v2155_v59  ;;  %2159 = vst [vmem:[#allocation3 + $0x2] sm:$0x3] %v2155_v59 }
 0x4b4   : > { %v3084_v61 = vpop.eup %3083 }
 0x4b5   : > { %v2157_v62 = vmul.f32 %v3084_v61, %v3082_v60 }
 0x4b7   : > { %2158 = vst [vmem:[#allocation2 + $0x2] sm:$0x3] %v2157_v62  ;;  %v2160_v63 = vpack.c.bf16 %v2157_v62, %v2157_v62 }
 0x4b9   : > { %2603 = vmatmul.mubr.bf16.vlgmr.msra.gmra.mrb[8].mxu0 %v2160_v63 }
 0x589   :  { %1117 = sbr.rel (!%p1115_p3) target bundleno = 624 (0x270), region = 95 }
 0x58c   : > { %v2266_v1 = vpop.f32.mrb[8].mxu0 }
 0x58d   : > { %v2267_v2 = vadd.f32 %v2567_v0, %v2266_v1  ;;  %v2604_v3 = vpop.f32.mrb[9].mxu0 }
 0x58e   : > { %v2269_v4 = vpop.f32.mrb[10].mxu0 }
 0x58f   : > { %2274 = vst [vmem:[%s2273_s17] sm:$0x3] %v2267_v2  ;;  %2275 = vst [vmem:[#allocation4] sm:$0x3] %v2267_v2  ;;  %v2605_v5 = vpop.f32.mrb[11].mxu0 }
 0x590   :  { %2280 = vsyncpa [#allocation6], 1 }
 0x591   :  { %2281 = vsyncpa [#allocation8], 1 }

</bundles_post_ra>
